<compile_context>
chip_gen: v7x
topology: tpu7x:2x2x1
jax: 0.10.0
libtpu: 0.0.40
codegen_flags: <defaults>
</compile_context>

<pallas_src>
import math
from functools import partial

import jax
import jax.numpy as jnp
from jax import lax
from jax.experimental import pallas as pl
from jax.experimental.pallas import tpu as pltpu

VMEM_SPEC = pl.BlockSpec(memory_space=pltpu.MemorySpace.VMEM)
SMEM_SPEC = pl.BlockSpec(memory_space=pltpu.MemorySpace.SMEM)

CFG = dict(
    vocab=50,
    max_pos=16,
    type_vocab=2,
    hidden=32,
    ffn=64,
    layers=2,
    heads=2,
    labels=dict(mulms=7, art=11, az_cl=7, dri=5),
)
HEAD_ORDER = ('mulms', 'art', 'az_cl', 'dri')


# ----------------------------- shared math helpers -----------------------------

def _gelu(x):
    # TODO(synk): exact erf GELU in HF BERT; tanh approximation here.
    c = math.sqrt(2.0 / math.pi)
    return 0.5 * x * (1.0 + jnp.tanh(c * (x + 0.044715 * x * x * x)))


def _layernorm_1pass(x, gamma, beta, eps=1e-12):
    # One-pass LN: the two reductions are independent (shorter serial XLU chain).
    n = x.shape[-1]
    s1 = jnp.sum(x, axis=-1, keepdims=True)
    s2 = jnp.sum(x * x, axis=-1, keepdims=True)
    mu = s1 * (1.0 / n)
    var = jnp.maximum(s2 * (1.0 / n) - mu * mu, 0.0)
    return (x - mu) * lax.rsqrt(var + eps) * gamma + beta


# --------------------------------- fused kernel ---------------------------------

def fused_kernel(flag_ref, ids_tt_ref, mask_ref, tables_ref, wqkv_ref, wo_ref,
                 w1_ref, w2_ref, vecs_ref, head_ref, out_ref,
                 *, batch, seq, vocab_pad, max_pos, num_heads, num_layers, lmax):
    B, S = batch, seq
    BS = B * S
    H = tables_ref.shape[-1]
    F = w1_ref.shape[-1]
    dh = H // num_heads
    scale = 1.0 / math.sqrt(dh)

    # ---- embeddings: gather as one-hot matmul on the (idle) MXU ----
    ids = ids_tt_ref[0]                                                    # [BS, 1] int32
    tts = ids_tt_ref[1]                                                    # [BS, 1] int32
    onehot = (ids == lax.broadcasted_iota(jnp.int32, (BS, vocab_pad), 1)
              ).astype(jnp.float32)                                        # [BS, Vpad]
    word = jnp.dot(onehot, tables_ref[0:vocab_pad, :],
                   preferred_element_type=jnp.float32)                     # [BS, H]
    pos = tables_ref[vocab_pad:vocab_pad + S, :]                           # [S, H] (aligned)
    pos = jnp.concatenate([pos] * B, axis=0)                               # [BS, H]
    t_off = vocab_pad + max_pos
    typ = jnp.where(tts > 0, tables_ref[t_off + 1, :], tables_ref[t_off, :])  # [BS, H]
    x = _layernorm_1pass(word + pos + typ,
                         tables_ref[t_off + 2, :], tables_ref[t_off + 3, :])

    # ---- additive mask (key padding + block-diagonal batch), hoisted; no int division ----
    key_valid = mask_ref[...] > 0                                          # [1, BS]
    row_b = lax.broadcasted_iota(jnp.int32, (B, S, BS), 0).reshape(BS, BS)  # i // S
    col_b = lax.broadcasted_iota(jnp.int32, (BS, B, S), 1).reshape(BS, BS)  # j // S
    additive = jnp.where((row_b == col_b) & key_valid, 0.0, -10000.0)      # [BS, BS]

    # ---- transformer layers (static unroll; batch folded into sequence) ----
    for l in range(num_layers):
        attn = jnp.zeros((BS, H), jnp.float32)
        for h in range(num_heads):
            base = (l * num_heads + h) * 3

            def _proj(j, base=base):
                return (jnp.dot(x, wqkv_ref[base + j, 0:H, :],
                                preferred_element_type=jnp.float32)
                        + wqkv_ref[base + j, H, :])                        # bias row

            qh, kh, vh = _proj(0), _proj(1), _proj(2)                      # [BS, dh] each
            s = lax.dot_general(qh, kh, (((1,), (1,)), ((), ())),
                                preferred_element_type=jnp.float32)        # [BS, BS]
            s = s * scale + additive
            m = jnp.max(s, axis=-1, keepdims=True)
            e = jnp.exp(s - m)
            p = e * pl.reciprocal(jnp.sum(e, axis=-1, keepdims=True), approx=True)
            ctx = jnp.dot(p, vh, preferred_element_type=jnp.float32)       # [BS, dh]
            attn = attn + jnp.dot(ctx, wo_ref[l * num_heads + h],          # head-merge folded
                                  preferred_element_type=jnp.float32)      # [BS, H]
        attn = attn + vecs_ref[l * 5 + 4, :]                               # bo
        x1 = _layernorm_1pass(x + attn, vecs_ref[l * 5 + 0, :], vecs_ref[l * 5 + 1, :])

        hid = _gelu(jnp.dot(x1, w1_ref[l, 0:H, :],
                            preferred_element_type=jnp.float32) + w1_ref[l, H, :])
        ffn = jnp.dot(hid, w2_ref[l, 0:F, :],
                      preferred_element_type=jnp.float32) + w2_ref[l, F, :]
        x = _layernorm_1pass(x1 + ffn, vecs_ref[l * 5 + 2, :], vecs_ref[l * 5 + 3, :])

    # ---- [CLS] + task heads (all 4, static indexing; select by runtime flag) ----
    cls_emb = x.reshape(B, S, H)[:, 0, :]                                  # [B, H]
    # TODO(synk): eval-mode dropout == identity (training would use pltpu.prng_random_bits).
    flag = flag_ref[0]
    logits = jnp.zeros((B, lmax), jnp.float32)
    for f in range(head_ref.shape[0]):                                     # MXU idle: 4 tiny dots
        lg = (jnp.dot(cls_emb, head_ref[f, 0:H, :],
                      preferred_element_type=jnp.float32) + head_ref[f, H, :])
        logits = jnp.where(flag == f, lg, logits)
    sig = 0.5 * (jnp.tanh(0.5 * logits) + 1.0)                             # sigmoid, one EUP op

    out_ref[...] = jnp.concatenate([cls_emb, logits, sig], axis=-1)        # single packed output


# --------------------------------- model forward ---------------------------------

def all_task_az_classifier_forward(prepared, input_ids, attention_mask,
                                   token_type_ids, dataset_flag):
    dims = prepared['dims']
    B, S = input_ids.shape
    BS = B * S
    H, lmax = dims['hidden'], dims['lmax']

    ids_tt = jnp.stack([input_ids.reshape(BS, 1),
                        token_type_ids.reshape(BS, 1)]).astype(jnp.int32)   # [2, BS, 1]
    mask = attention_mask.reshape(1, BS).astype(jnp.int32)                  # [1, BS]
    flag = jnp.full((1,), dataset_flag, dtype=jnp.int32)                    # SMEM scalar

    out = pl.pallas_call(
        partial(fused_kernel, batch=B, seq=S, vocab_pad=dims['vocab_pad'],
                max_pos=dims['max_pos'], num_heads=dims['heads'],
                num_layers=dims['layers'], lmax=lmax),
        out_shape=jax.ShapeDtypeStruct((B, H + 2 * lmax), jnp.float32),
        in_specs=[SMEM_SPEC] + [VMEM_SPEC] * 9,
        out_specs=VMEM_SPEC,
    )(flag, ids_tt, mask, prepared['tables'], prepared['wqkv'], prepared['wo'],
      prepared['w1'], prepared['w2'], prepared['vecs'], prepared['head'])

    n_lab = dims['labels'][HEAD_ORDER[dataset_flag]]
    cls_emb = out[:, :H]
    logits = out[:, H:H + n_lab]
    sig = out[:, H + lmax:H + lmax + n_lab]
    return logits, sig, cls_emb


# ------------------------------ deterministic init -------------------------------

def init_params(key, cfg):
    """Raw nn.Module-style params (nn.Linear weights are [out_features, in_features])."""
    H, F = cfg['hidden'], cfg['ffn']
    keys = iter(jax.random.split(key, 128))

    def nrm(shape, scale=0.02):
        return scale * jax.random.normal(next(keys), shape, dtype=jnp.float32)

    params = dict(
        word_emb=nrm((cfg['vocab'], H)),
        pos_emb=nrm((cfg['max_pos'], H)),
        type_emb=nrm((cfg['type_vocab'], H)),
        emb_ln_g=1.0 + nrm((H,), 0.05), emb_ln_b=nrm((H,), 0.05),
        layers=[], heads={},
    )
    for _ in range(cfg['layers']):
        params['layers'].append(dict(
            wq=nrm((H, H)), bq=nrm((H,)),
            wk=nrm((H, H)), bk=nrm((H,)),
            wv=nrm((H, H)), bv=nrm((H,)),
            wo=nrm((H, H)), bo=nrm((H,)),
            ln1_g=1.0 + nrm((H,), 0.05), ln1_b=nrm((H,), 0.05),
            w1=nrm((F, H)), b1=nrm((F,)),
            w2=nrm((H, F)), b2=nrm((H,)),
            ln2_g=1.0 + nrm((H,), 0.05), ln2_b=nrm((H,), 0.05),
        ))
    for name, n_lab in cfg['labels'].items():
        params['heads'][name] = dict(w=nrm((n_lab, H)), b=nrm((n_lab,)))
    return params


def prepare_params(params, cfg):
    """One-time packing: transposes, per-head splits, bias folding, table concat."""
    H, F, nh, L = cfg['hidden'], cfg['ffn'], cfg['heads'], cfg['layers']
    dh = H // nh
    lmax = max(cfg['labels'].values())
    vocab_pad = ((cfg['vocab'] + 7) // 8) * 8            # sublane-align pos-table offset

    word = jnp.zeros((vocab_pad, H), jnp.float32).at[:cfg['vocab']].set(params['word_emb'])
    tables = jnp.concatenate(
        [word, params['pos_emb'], params['type_emb'],
         params['emb_ln_g'][None, :], params['emb_ln_b'][None, :]], axis=0)   # [76, H]

    wqkv, wo, w1, w2, vecs = [], [], [], [], []
    for p in params['layers']:
        for h in range(nh):
            lo, hi = h * dh, (h + 1) * dh
            for w, b in ((p['wq'], p['bq']), (p['wk'], p['bk']), (p['wv'], p['bv'])):
                # [in,out] per-head slab with bias as the last row: [H+1, dh]
                wqkv.append(jnp.concatenate([w.T[:, lo:hi], b[None, lo:hi]], axis=0))
            wo.append(p['wo'].T[lo:hi, :])                                   # [dh, H]
        w1.append(jnp.concatenate([p['w1'].T, p['b1'][None, :]], axis=0))    # [H+1, F]
        w2.append(jnp.concatenate([p['w2'].T, p['b2'][None, :]], axis=0))    # [F+1, H]
        vecs += [p['ln1_g'], p['ln1_b'], p['ln2_g'], p['ln2_b'], p['bo']]

    head = []
    for name in HEAD_ORDER:
        hp = params['heads'][name]
        n_lab = hp['w'].shape[0]
        wpad = jnp.zeros((H, lmax), jnp.float32).at[:, :n_lab].set(hp['w'].T)
        bpad = jnp.zeros((1, lmax), jnp.float32).at[0, :n_lab].set(hp['b'])
        head.append(jnp.concatenate([wpad, bpad], axis=0))                   # [H+1, lmax]

    return dict(
        tables=tables,
        wqkv=jnp.stack(wqkv),        # [L*nh*3, H+1, dh]
        wo=jnp.stack(wo),            # [L*nh,   dh,  H ]
        w1=jnp.stack(w1),            # [L, H+1, F]
        w2=jnp.stack(w2),            # [L, F+1, H]
        vecs=jnp.stack(vecs),        # [L*5, H]
        head=jnp.stack(head),        # [4, H+1, lmax]
        dims=dict(hidden=H, ffn=F, heads=nh, layers=L, lmax=lmax,
                  vocab_pad=vocab_pad, max_pos=cfg['max_pos'],
                  labels=dict(cfg['labels'])),
    )


# --------------------------- pure-JAX reference (check) ---------------------------

def reference_forward(params, input_ids, attention_mask, token_type_ids, dataset_flag, cfg):
    H, nh = cfg['hidden'], cfg['heads']
    dh = H // nh
    B, S = input_ids.shape

    def ln(x, g, b, eps=1e-12):
        mu = jnp.mean(x, axis=-1, keepdims=True)
        var = jnp.mean((x - mu) ** 2, axis=-1, keepdims=True)
        return (x - mu) / jnp.sqrt(var + eps) * g + b

    x = (params['word_emb'][input_ids]
         + params['pos_emb'][jnp.arange(S)][None]
         + params['type_emb'][token_type_ids])
    x = ln(x, params['emb_ln_g'], params['emb_ln_b'])
    add_mask = (1.0 - attention_mask.astype(jnp.float32)) * -10000.0         # [B, S]

    for p in params['layers']:
        q = (x @ p['wq'].T + p['bq']).reshape(B, S, nh, dh).transpose(0, 2, 1, 3)
        k = (x @ p['wk'].T + p['bk']).reshape(B, S, nh, dh).transpose(0, 2, 1, 3)
        v = (x @ p['wv'].T + p['bv']).reshape(B, S, nh, dh).transpose(0, 2, 1, 3)
        s = jnp.einsum('bhqd,bhkd->bhqk', q, k) / math.sqrt(dh) + add_mask[:, None, None, :]
        a = jax.nn.softmax(s, axis=-1)
        ctx = jnp.einsum('bhqk,bhkd->bhqd', a, v).transpose(0, 2, 1, 3).reshape(B, S, H)
        x1 = ln(x + ctx @ p['wo'].T + p['bo'], p['ln1_g'], p['ln1_b'])
        hid = _gelu(x1 @ p['w1'].T + p['b1'])
        x = ln(x1 + hid @ p['w2'].T + p['b2'], p['ln2_g'], p['ln2_b'])

    cls = x[:, 0]
    hp = params['heads'][HEAD_ORDER[dataset_flag]]
    logits = cls @ hp['w'].T + hp['b']
    return logits, jax.nn.sigmoid(logits), cls


# ------------------------------------- main ---------------------------------------

if __name__ == "__main__":
    root = jax.random.PRNGKey(0)
    pkey, dkey = jax.random.split(root)

    raw = init_params(pkey, CFG)
    prepared = prepare_params(raw, CFG)          # all packing done once, off the forward path

    B, S = 2, 8
    input_ids = jax.random.randint(dkey, (B, S), 0, CFG['vocab'], dtype=jnp.int32)
    token_type_ids = jnp.concatenate(
        [jnp.zeros((B, S // 2), jnp.int32), jnp.ones((B, S // 2), jnp.int32)], axis=1)
    attention_mask = jnp.ones((B, S), jnp.int32).at[1, S - 2:].set(0)   # pad tail of batch 1

    for flag in (0, 1):   # same executable serves every head (runtime flag in SMEM)
        logits, sig, cls_emb = all_task_az_classifier_forward(
            prepared, input_ids, attention_mask, token_type_ids, flag)
        jax.block_until_ready((logits, sig, cls_emb))

        n_lab = CFG['labels'][HEAD_ORDER[flag]]
        assert logits.shape == (B, n_lab) and sig.shape == (B, n_lab)
        assert cls_emb.shape == (B, CFG['hidden'])
        assert bool(jnp.all(jnp.isfinite(logits)))
        assert bool(jnp.all((sig >= 0.0) & (sig <= 1.0)))

        ref_logits, ref_sig, ref_cls = reference_forward(
            raw, input_ids, attention_mask, token_type_ids, flag, CFG)
        assert float(jnp.max(jnp.abs(logits - ref_logits))) < 5e-2
        assert float(jnp.max(jnp.abs(sig - ref_sig))) < 5e-2
        assert float(jnp.max(jnp.abs(cls_emb - ref_cls))) < 5e-2

    print("KERNEL_OK")
</pallas_src>

<mosaic_0001>
module attributes {stable_mosaic.version = 11 : i64} {
  func.func @fused_kernel(%arg0: memref<1xi32, #tpu.memory_space<smem>>, %arg1: memref<2x16x1xi32, #tpu.memory_space<vmem>>, %arg2: memref<1x16xi32, #tpu.memory_space<vmem>>, %arg3: memref<76x32xf32, #tpu.memory_space<vmem>>, %arg4: memref<12x33x16xf32, #tpu.memory_space<vmem>>, %arg5: memref<4x16x32xf32, #tpu.memory_space<vmem>>, %arg6: memref<2x33x64xf32, #tpu.memory_space<vmem>>, %arg7: memref<2x65x32xf32, #tpu.memory_space<vmem>>, %arg8: memref<10x32xf32, #tpu.memory_space<vmem>>, %arg9: memref<4x33x11xf32, #tpu.memory_space<vmem>>, %arg10: memref<2x54xf32, #tpu.memory_space<vmem>>) attributes {dimension_semantics = [], scalar_prefetch = 0 : i64, scratch_operands = 0 : i64, tpu.core_type = #tpu.core_type<tc>} {
    %c0 = arith.constant 0 : index
    %c0_0 = arith.constant 0 : index
    %c0_1 = arith.constant 0 : index
    %0 = vector.load %arg1[%c0, %c0_0, %c0_1] : memref<2x16x1xi32, #tpu.memory_space<vmem>>, vector<1x16x1xi32>
    %1 = vector.shape_cast %0 : vector<1x16x1xi32> to vector<16x1xi32>
    %c1 = arith.constant 1 : index
    %c0_2 = arith.constant 0 : index
    %c0_3 = arith.constant 0 : index
    %2 = vector.load %arg1[%c1, %c0_2, %c0_3] : memref<2x16x1xi32, #tpu.memory_space<vmem>>, vector<1x16x1xi32>
    %3 = vector.shape_cast %2 : vector<1x16x1xi32> to vector<16x1xi32>
    %4 = tpu.iota {dimensions = array<i32: 1>} : vector<16x56xi32>
    %5 = vector.broadcast %1 : vector<16x1xi32> to vector<16x56xi32>
    %6 = arith.cmpi eq, %5, %4 : vector<16x56xi32>
    %7 = arith.extui %6 : vector<16x56xi1> to vector<16x56xi32>
    %8 = arith.sitofp %7 : vector<16x56xi32> to vector<16x56xf32>
    %c0_4 = arith.constant 0 : index
    %c0_5 = arith.constant 0 : index
    %9 = vector.load %arg3[%c0_4, %c0_5] : memref<76x32xf32, #tpu.memory_space<vmem>>, vector<56x32xf32>
    %cst = arith.constant dense<0.000000e+00> : vector<16x32xf32>
    %10 = tpu.matmul %8, %9, %cst {dimension_numbers = #tpu.dot_dimension_numbers<[1], [0], [0], [1], [0, 0, 1, 1], [], []>} : vector<16x56xf32>, vector<56x32xf32>, vector<16x32xf32> -> vector<16x32xf32>
    %c56 = arith.constant 56 : index
    %c0_6 = arith.constant 0 : index
    %11 = vector.load %arg3[%c56, %c0_6] : memref<76x32xf32, #tpu.memory_space<vmem>>, vector<8x32xf32>
    %12 = tpu.concatenate %11, %11 in 0 : vector<8x32xf32>, vector<8x32xf32> -> vector<16x32xf32>
    %c0_i32 = arith.constant 0 : i32
    %13 = vector.broadcast %c0_i32 : i32 to vector<16x1xi32>
    %14 = arith.cmpi sgt, %3, %13 : vector<16x1xi32>
    %c73 = arith.constant 73 : index
    %c0_7 = arith.constant 0 : index
    %15 = vector.load %arg3[%c73, %c0_7] : memref<76x32xf32, #tpu.memory_space<vmem>>, vector<1x32xf32>
    %16 = vector.shape_cast %15 : vector<1x32xf32> to vector<32xf32>
    %c72 = arith.constant 72 : index
    %c0_8 = arith.constant 0 : index
    %17 = vector.load %arg3[%c72, %c0_8] : memref<76x32xf32, #tpu.memory_space<vmem>>, vector<1x32xf32>
    %18 = vector.shape_cast %17 : vector<1x32xf32> to vector<32xf32>
    %19 = vector.shape_cast %14 : vector<16x1xi1> to vector<16x1xi1>
    %20 = vector.broadcast %19 : vector<16x1xi1> to vector<16x32xi1>
    %21 = vector.shape_cast %16 : vector<32xf32> to vector<1x32xf32>
    %22 = vector.broadcast %21 : vector<1x32xf32> to vector<16x32xf32>
    %23 = vector.shape_cast %18 : vector<32xf32> to vector<1x32xf32>
    %24 = vector.broadcast %23 : vector<1x32xf32> to vector<16x32xf32>
    %25 = arith.select %20, %22, %24 : vector<16x32xi1>, vector<16x32xf32>
    %26 = arith.addf %10, %12 : vector<16x32xf32>
    %27 = arith.addf %26, %25 : vector<16x32xf32>
    %c74 = arith.constant 74 : index
    %c0_9 = arith.constant 0 : index
    %28 = vector.load %arg3[%c74, %c0_9] : memref<76x32xf32, #tpu.memory_space<vmem>>, vector<1x32xf32>
    %29 = vector.shape_cast %28 : vector<1x32xf32> to vector<32xf32>
    %c75 = arith.constant 75 : index
    %c0_10 = arith.constant 0 : index
    %30 = vector.load %arg3[%c75, %c0_10] : memref<76x32xf32, #tpu.memory_space<vmem>>, vector<1x32xf32>
    %31 = vector.shape_cast %30 : vector<1x32xf32> to vector<32xf32>
    %cst_11 = arith.constant dense<0.000000e+00> : vector<16xf32>
    %32 = vector.multi_reduction <add>, %27, %cst_11 [1] : vector<16x32xf32> to vector<16xf32>
    %33 = vector.shape_cast %32 : vector<16xf32> to vector<16x1xf32>
    %34 = arith.mulf %27, %27 : vector<16x32xf32>
    %cst_12 = arith.constant dense<0.000000e+00> : vector<16xf32>
    %35 = vector.multi_reduction <add>, %34, %cst_12 [1] : vector<16x32xf32> to vector<16xf32>
    %36 = vector.shape_cast %35 : vector<16xf32> to vector<16x1xf32>
    %cst_13 = arith.constant 3.125000e-02 : f32
    %37 = vector.broadcast %cst_13 : f32 to vector<16x1xf32>
    %38 = arith.mulf %33, %37 : vector<16x1xf32>
    %cst_14 = arith.constant 3.125000e-02 : f32
    %39 = vector.broadcast %cst_14 : f32 to vector<16x1xf32>
    %40 = arith.mulf %36, %39 : vector<16x1xf32>
    %41 = arith.mulf %38, %38 : vector<16x1xf32>
    %42 = arith.subf %40, %41 : vector<16x1xf32>
    %cst_15 = arith.constant 0.000000e+00 : f32
    %43 = vector.broadcast %cst_15 : f32 to vector<16x1xf32>
    %44 = arith.maximumf %42, %43 : vector<16x1xf32>
    %45 = vector.broadcast %38 : vector<16x1xf32> to vector<16x32xf32>
    %46 = arith.subf %27, %45 : vector<16x32xf32>
    %cst_16 = arith.constant 9.99999996E-13 : f32
    %47 = vector.broadcast %cst_16 : f32 to vector<16x1xf32>
    %48 = arith.addf %44, %47 : vector<16x1xf32>
    %49 = math.rsqrt %48 : vector<16x1xf32>
    %50 = vector.broadcast %49 : vector<16x1xf32> to vector<16x32xf32>
    %51 = arith.mulf %46, %50 : vector<16x32xf32>
    %52 = vector.shape_cast %29 : vector<32xf32> to vector<1x32xf32>
    %53 = vector.broadcast %52 : vector<1x32xf32> to vector<16x32xf32>
    %54 = arith.mulf %51, %53 : vector<16x32xf32>
    %55 = vector.shape_cast %31 : vector<32xf32> to vector<1x32xf32>
    %56 = vector.broadcast %55 : vector<1x32xf32> to vector<16x32xf32>
    %57 = arith.addf %54, %56 : vector<16x32xf32>
    %c0_17 = arith.constant 0 : index
    %c0_18 = arith.constant 0 : index
    %58 = vector.load %arg2[%c0_17, %c0_18] : memref<1x16xi32, #tpu.memory_space<vmem>>, vector<1x16xi32>
    %c0_i32_19 = arith.constant 0 : i32
    %59 = vector.broadcast %c0_i32_19 : i32 to vector<1x16xi32>
    %60 = arith.cmpi sgt, %58, %59 : vector<1x16xi32>
    %61 = tpu.iota {dimensions = array<i32: 0>} : vector<2x8x16xi32>
    %62 = vector.shape_cast %61 : vector<2x8x16xi32> to vector<16x16xi32>
    %63 = tpu.iota {dimensions = array<i32: 1>} : vector<16x2x8xi32>
    %64 = vector.shape_cast %63 : vector<16x2x8xi32> to vector<16x16xi32>
    %65 = arith.cmpi eq, %62, %64 : vector<16x16xi32>
    %66 = vector.broadcast %60 : vector<1x16xi1> to vector<16x16xi1>
    %67 = arith.andi %65, %66 : vector<16x16xi1>
    %cst_20 = arith.constant 0.000000e+00 : f32
    %cst_21 = arith.constant -1.000000e+04 : f32
    %68 = vector.broadcast %cst_20 : f32 to vector<16x16xf32>
    %69 = vector.broadcast %cst_21 : f32 to vector<16x16xf32>
    %70 = arith.select %67, %68, %69 : vector<16x16xi1>, vector<16x16xf32>
    %cst_22 = arith.constant 0.000000e+00 : f32
    %71 = vector.broadcast %cst_22 : f32 to vector<16x32xf32>
    %c0_23 = arith.constant 0 : index
    %c0_24 = arith.constant 0 : index
    %c0_25 = arith.constant 0 : index
    %72 = vector.load %arg4[%c0_23, %c0_24, %c0_25] : memref<12x33x16xf32, #tpu.memory_space<vmem>>, vector<1x32x16xf32>
    %73 = vector.shape_cast %72 : vector<1x32x16xf32> to vector<32x16xf32>
    %cst_26 = arith.constant dense<0.000000e+00> : vector<16x16xf32>
    %74 = tpu.matmul %57, %73, %cst_26 {dimension_numbers = #tpu.dot_dimension_numbers<[1], [0], [0], [1], [0, 0, 1, 1], [], []>} : vector<16x32xf32>, vector<32x16xf32>, vector<16x16xf32> -> vector<16x16xf32>
    %c0_27 = arith.constant 0 : index
    %c32 = arith.constant 32 : index
    %c0_28 = arith.constant 0 : index
    %75 = vector.load %arg4[%c0_27, %c32, %c0_28] : memref<12x33x16xf32, #tpu.memory_space<vmem>>, vector<1x1x16xf32>
    %76 = vector.shape_cast %75 : vector<1x1x16xf32> to vector<16xf32>
    %77 = vector.shape_cast %76 : vector<16xf32> to vector<1x16xf32>
    %78 = vector.broadcast %77 : vector<1x16xf32> to vector<16x16xf32>
    %79 = arith.addf %74, %78 : vector<16x16xf32>
    %c1_29 = arith.constant 1 : index
    %c0_30 = arith.constant 0 : index
    %c0_31 = arith.constant 0 : index
    %80 = vector.load %arg4[%c1_29, %c0_30, %c0_31] : memref<12x33x16xf32, #tpu.memory_space<vmem>>, vector<1x32x16xf32>
    %81 = vector.shape_cast %80 : vector<1x32x16xf32> to vector<32x16xf32>
    %cst_32 = arith.constant dense<0.000000e+00> : vector<16x16xf32>
    %82 = tpu.matmul %57, %81, %cst_32 {dimension_numbers = #tpu.dot_dimension_numbers<[1], [0], [0], [1], [0, 0, 1, 1], [], []>} : vector<16x32xf32>, vector<32x16xf32>, vector<16x16xf32> -> vector<16x16xf32>
    %c1_33 = arith.constant 1 : index
    %c32_34 = arith.constant 32 : index
    %c0_35 = arith.constant 0 : index
    %83 = vector.load %arg4[%c1_33, %c32_34, %c0_35] : memref<12x33x16xf32, #tpu.memory_space<vmem>>, vector<1x1x16xf32>
    %84 = vector.shape_cast %83 : vector<1x1x16xf32> to vector<16xf32>
    %85 = vector.shape_cast %84 : vector<16xf32> to vector<1x16xf32>
    %86 = vector.broadcast %85 : vector<1x16xf32> to vector<16x16xf32>
    %87 = arith.addf %82, %86 : vector<16x16xf32>
    %c2 = arith.constant 2 : index
    %c0_36 = arith.constant 0 : index
    %c0_37 = arith.constant 0 : index
    %88 = vector.load %arg4[%c2, %c0_36, %c0_37] : memref<12x33x16xf32, #tpu.memory_space<vmem>>, vector<1x32x16xf32>
    %89 = vector.shape_cast %88 : vector<1x32x16xf32> to vector<32x16xf32>
    %cst_38 = arith.constant dense<0.000000e+00> : vector<16x16xf32>
    %90 = tpu.matmul %57, %89, %cst_38 {dimension_numbers = #tpu.dot_dimension_numbers<[1], [0], [0], [1], [0, 0, 1, 1], [], []>} : vector<16x32xf32>, vector<32x16xf32>, vector<16x16xf32> -> vector<16x16xf32>
    %c2_39 = arith.constant 2 : index
    %c32_40 = arith.constant 32 : index
    %c0_41 = arith.constant 0 : index
    %91 = vector.load %arg4[%c2_39, %c32_40, %c0_41] : memref<12x33x16xf32, #tpu.memory_space<vmem>>, vector<1x1x16xf32>
    %92 = vector.shape_cast %91 : vector<1x1x16xf32> to vector<16xf32>
    %93 = vector.shape_cast %92 : vector<16xf32> to vector<1x16xf32>
    %94 = vector.broadcast %93 : vector<1x16xf32> to vector<16x16xf32>
    %95 = arith.addf %90, %94 : vector<16x16xf32>
    %cst_42 = arith.constant dense<0.000000e+00> : vector<16x16xf32>
    %96 = tpu.matmul %79, %87, %cst_42 {dimension_numbers = #tpu.dot_dimension_numbers<[1], [1], [0], [0], [0, 0, 1, 0], [], []>} : vector<16x16xf32>, vector<16x16xf32>, vector<16x16xf32> -> vector<16x16xf32>
    %cst_43 = arith.constant 2.500000e-01 : f32
    %97 = vector.broadcast %cst_43 : f32 to vector<16x16xf32>
    %98 = arith.mulf %96, %97 : vector<16x16xf32>
    %99 = arith.addf %98, %70 : vector<16x16xf32>
    %cst_44 = arith.constant dense<0xFF800000> : vector<16xf32>
    %100 = vector.multi_reduction <maximumf>, %99, %cst_44 [1] : vector<16x16xf32> to vector<16xf32>
    %101 = vector.shape_cast %100 : vector<16xf32> to vector<16x1xf32>
    %102 = vector.broadcast %101 : vector<16x1xf32> to vector<16x16xf32>
    %103 = arith.subf %99, %102 : vector<16x16xf32>
    %104 = math.exp %103 : vector<16x16xf32>
    %cst_45 = arith.constant dense<0.000000e+00> : vector<16xf32>
    %105 = vector.multi_reduction <add>, %104, %cst_45 [1] : vector<16x16xf32> to vector<16xf32>
    %106 = vector.shape_cast %105 : vector<16xf32> to vector<16x1xf32>
    %107 = tpu.reciprocal %106 {approx = true} : vector<16x1xf32> -> vector<16x1xf32>
    %108 = vector.broadcast %107 : vector<16x1xf32> to vector<16x16xf32>
    %109 = arith.mulf %104, %108 : vector<16x16xf32>
    %cst_46 = arith.constant dense<0.000000e+00> : vector<16x16xf32>
    %110 = tpu.matmul %109, %95, %cst_46 {dimension_numbers = #tpu.dot_dimension_numbers<[1], [0], [0], [1], [0, 0, 1, 1], [], []>} : vector<16x16xf32>, vector<16x16xf32>, vector<16x16xf32> -> vector<16x16xf32>
    %c0_47 = arith.constant 0 : index
    %c0_48 = arith.constant 0 : index
    %c0_49 = arith.constant 0 : index
    %111 = vector.load %arg5[%c0_47, %c0_48, %c0_49] : memref<4x16x32xf32, #tpu.memory_space<vmem>>, vector<1x16x32xf32>
    %112 = vector.shape_cast %111 : vector<1x16x32xf32> to vector<16x32xf32>
    %cst_50 = arith.constant dense<0.000000e+00> : vector<16x32xf32>
    %113 = tpu.matmul %110, %112, %cst_50 {dimension_numbers = #tpu.dot_dimension_numbers<[1], [0], [0], [1], [0, 0, 1, 1], [], []>} : vector<16x16xf32>, vector<16x32xf32>, vector<16x32xf32> -> vector<16x32xf32>
    %114 = arith.addf %71, %113 : vector<16x32xf32>
    %c3 = arith.constant 3 : index
    %c0_51 = arith.constant 0 : index
    %c0_52 = arith.constant 0 : index
    %115 = vector.load %arg4[%c3, %c0_51, %c0_52] : memref<12x33x16xf32, #tpu.memory_space<vmem>>, vector<1x32x16xf32>
    %116 = vector.shape_cast %115 : vector<1x32x16xf32> to vector<32x16xf32>
    %cst_53 = arith.constant dense<0.000000e+00> : vector<16x16xf32>
    %117 = tpu.matmul %57, %116, %cst_53 {dimension_numbers = #tpu.dot_dimension_numbers<[1], [0], [0], [1], [0, 0, 1, 1], [], []>} : vector<16x32xf32>, vector<32x16xf32>, vector<16x16xf32> -> vector<16x16xf32>
    %c3_54 = arith.constant 3 : index
    %c32_55 = arith.constant 32 : index
    %c0_56 = arith.constant 0 : index
    %118 = vector.load %arg4[%c3_54, %c32_55, %c0_56] : memref<12x33x16xf32, #tpu.memory_space<vmem>>, vector<1x1x16xf32>
    %119 = vector.shape_cast %118 : vector<1x1x16xf32> to vector<16xf32>
    %120 = vector.shape_cast %119 : vector<16xf32> to vector<1x16xf32>
    %121 = vector.broadcast %120 : vector<1x16xf32> to vector<16x16xf32>
    %122 = arith.addf %117, %121 : vector<16x16xf32>
    %c4 = arith.constant 4 : index
    %c0_57 = arith.constant 0 : index
    %c0_58 = arith.constant 0 : index
    %123 = vector.load %arg4[%c4, %c0_57, %c0_58] : memref<12x33x16xf32, #tpu.memory_space<vmem>>, vector<1x32x16xf32>
    %124 = vector.shape_cast %123 : vector<1x32x16xf32> to vector<32x16xf32>
    %cst_59 = arith.constant dense<0.000000e+00> : vector<16x16xf32>
    %125 = tpu.matmul %57, %124, %cst_59 {dimension_numbers = #tpu.dot_dimension_numbers<[1], [0], [0], [1], [0, 0, 1, 1], [], []>} : vector<16x32xf32>, vector<32x16xf32>, vector<16x16xf32> -> vector<16x16xf32>
    %c4_60 = arith.constant 4 : index
    %c32_61 = arith.constant 32 : index
    %c0_62 = arith.constant 0 : index
    %126 = vector.load %arg4[%c4_60, %c32_61, %c0_62] : memref<12x33x16xf32, #tpu.memory_space<vmem>>, vector<1x1x16xf32>
    %127 = vector.shape_cast %126 : vector<1x1x16xf32> to vector<16xf32>
    %128 = vector.shape_cast %127 : vector<16xf32> to vector<1x16xf32>
    %129 = vector.broadcast %128 : vector<1x16xf32> to vector<16x16xf32>
    %130 = arith.addf %125, %129 : vector<16x16xf32>
    %c5 = arith.constant 5 : index
    %c0_63 = arith.constant 0 : index
    %c0_64 = arith.constant 0 : index
    %131 = vector.load %arg4[%c5, %c0_63, %c0_64] : memref<12x33x16xf32, #tpu.memory_space<vmem>>, vector<1x32x16xf32>
    %132 = vector.shape_cast %131 : vector<1x32x16xf32> to vector<32x16xf32>
    %cst_65 = arith.constant dense<0.000000e+00> : vector<16x16xf32>
    %133 = tpu.matmul %57, %132, %cst_65 {dimension_numbers = #tpu.dot_dimension_numbers<[1], [0], [0], [1], [0, 0, 1, 1], [], []>} : vector<16x32xf32>, vector<32x16xf32>, vector<16x16xf32> -> vector<16x16xf32>
    %c5_66 = arith.constant 5 : index
    %c32_67 = arith.constant 32 : index
    %c0_68 = arith.constant 0 : index
    %134 = vector.load %arg4[%c5_66, %c32_67, %c0_68] : memref<12x33x16xf32, #tpu.memory_space<vmem>>, vector<1x1x16xf32>
    %135 = vector.shape_cast %134 : vector<1x1x16xf32> to vector<16xf32>
    %136 = vector.shape_cast %135 : vector<16xf32> to vector<1x16xf32>
    %137 = vector.broadcast %136 : vector<1x16xf32> to vector<16x16xf32>
    %138 = arith.addf %133, %137 : vector<16x16xf32>
    %cst_69 = arith.constant dense<0.000000e+00> : vector<16x16xf32>
    %139 = tpu.matmul %122, %130, %cst_69 {dimension_numbers = #tpu.dot_dimension_numbers<[1], [1], [0], [0], [0, 0, 1, 0], [], []>} : vector<16x16xf32>, vector<16x16xf32>, vector<16x16xf32> -> vector<16x16xf32>
    %cst_70 = arith.constant 2.500000e-01 : f32
    %140 = vector.broadcast %cst_70 : f32 to vector<16x16xf32>
    %141 = arith.mulf %139, %140 : vector<16x16xf32>
    %142 = arith.addf %141, %70 : vector<16x16xf32>
    %cst_71 = arith.constant dense<0xFF800000> : vector<16xf32>
    %143 = vector.multi_reduction <maximumf>, %142, %cst_71 [1] : vector<16x16xf32> to vector<16xf32>
    %144 = vector.shape_cast %143 : vector<16xf32> to vector<16x1xf32>
    %145 = vector.broadcast %144 : vector<16x1xf32> to vector<16x16xf32>
    %146 = arith.subf %142, %145 : vector<16x16xf32>
    %147 = math.exp %146 : vector<16x16xf32>
    %cst_72 = arith.constant dense<0.000000e+00> : vector<16xf32>
    %148 = vector.multi_reduction <add>, %147, %cst_72 [1] : vector<16x16xf32> to vector<16xf32>
    %149 = vector.shape_cast %148 : vector<16xf32> to vector<16x1xf32>
    %150 = tpu.reciprocal %149 {approx = true} : vector<16x1xf32> -> vector<16x1xf32>
    %151 = vector.broadcast %150 : vector<16x1xf32> to vector<16x16xf32>
    %152 = arith.mulf %147, %151 : vector<16x16xf32>
    %cst_73 = arith.constant dense<0.000000e+00> : vector<16x16xf32>
    %153 = tpu.matmul %152, %138, %cst_73 {dimension_numbers = #tpu.dot_dimension_numbers<[1], [0], [0], [1], [0, 0, 1, 1], [], []>} : vector<16x16xf32>, vector<16x16xf32>, vector<16x16xf32> -> vector<16x16xf32>
    %c1_74 = arith.constant 1 : index
    %c0_75 = arith.constant 0 : index
    %c0_76 = arith.constant 0 : index
    %154 = vector.load %arg5[%c1_74, %c0_75, %c0_76] : memref<4x16x32xf32, #tpu.memory_space<vmem>>, vector<1x16x32xf32>
    %155 = vector.shape_cast %154 : vector<1x16x32xf32> to vector<16x32xf32>
    %cst_77 = arith.constant dense<0.000000e+00> : vector<16x32xf32>
    %156 = tpu.matmul %153, %155, %cst_77 {dimension_numbers = #tpu.dot_dimension_numbers<[1], [0], [0], [1], [0, 0, 1, 1], [], []>} : vector<16x16xf32>, vector<16x32xf32>, vector<16x32xf32> -> vector<16x32xf32>
    %157 = arith.addf %114, %156 : vector<16x32xf32>
    %c4_78 = arith.constant 4 : index
    %c0_79 = arith.constant 0 : index
    %158 = vector.load %arg8[%c4_78, %c0_79] : memref<10x32xf32, #tpu.memory_space<vmem>>, vector<1x32xf32>
    %159 = vector.shape_cast %158 : vector<1x32xf32> to vector<32xf32>
    %160 = vector.shape_cast %159 : vector<32xf32> to vector<1x32xf32>
    %161 = vector.broadcast %160 : vector<1x32xf32> to vector<16x32xf32>
    %162 = arith.addf %157, %161 : vector<16x32xf32>
    %163 = arith.addf %57, %162 : vector<16x32xf32>
    %c0_80 = arith.constant 0 : index
    %c0_81 = arith.constant 0 : index
    %164 = vector.load %arg8[%c0_80, %c0_81] : memref<10x32xf32, #tpu.memory_space<vmem>>, vector<1x32xf32>
    %165 = vector.shape_cast %164 : vector<1x32xf32> to vector<32xf32>
    %c1_82 = arith.constant 1 : index
    %c0_83 = arith.constant 0 : index
    %166 = vector.load %arg8[%c1_82, %c0_83] : memref<10x32xf32, #tpu.memory_space<vmem>>, vector<1x32xf32>
    %167 = vector.shape_cast %166 : vector<1x32xf32> to vector<32xf32>
    %cst_84 = arith.constant dense<0.000000e+00> : vector<16xf32>
    %168 = vector.multi_reduction <add>, %163, %cst_84 [1] : vector<16x32xf32> to vector<16xf32>
    %169 = vector.shape_cast %168 : vector<16xf32> to vector<16x1xf32>
    %170 = arith.mulf %163, %163 : vector<16x32xf32>
    %cst_85 = arith.constant dense<0.000000e+00> : vector<16xf32>
    %171 = vector.multi_reduction <add>, %170, %cst_85 [1] : vector<16x32xf32> to vector<16xf32>
    %172 = vector.shape_cast %171 : vector<16xf32> to vector<16x1xf32>
    %cst_86 = arith.constant 3.125000e-02 : f32
    %173 = vector.broadcast %cst_86 : f32 to vector<16x1xf32>
    %174 = arith.mulf %169, %173 : vector<16x1xf32>
    %cst_87 = arith.constant 3.125000e-02 : f32
    %175 = vector.broadcast %cst_87 : f32 to vector<16x1xf32>
    %176 = arith.mulf %172, %175 : vector<16x1xf32>
    %177 = arith.mulf %174, %174 : vector<16x1xf32>
    %178 = arith.subf %176, %177 : vector<16x1xf32>
    %cst_88 = arith.constant 0.000000e+00 : f32
    %179 = vector.broadcast %cst_88 : f32 to vector<16x1xf32>
    %180 = arith.maximumf %178, %179 : vector<16x1xf32>
    %181 = vector.broadcast %174 : vector<16x1xf32> to vector<16x32xf32>
    %182 = arith.subf %163, %181 : vector<16x32xf32>
    %cst_89 = arith.constant 9.99999996E-13 : f32
    %183 = vector.broadcast %cst_89 : f32 to vector<16x1xf32>
    %184 = arith.addf %180, %183 : vector<16x1xf32>
    %185 = math.rsqrt %184 : vector<16x1xf32>
    %186 = vector.broadcast %185 : vector<16x1xf32> to vector<16x32xf32>
    %187 = arith.mulf %182, %186 : vector<16x32xf32>
    %188 = vector.shape_cast %165 : vector<32xf32> to vector<1x32xf32>
    %189 = vector.broadcast %188 : vector<1x32xf32> to vector<16x32xf32>
    %190 = arith.mulf %187, %189 : vector<16x32xf32>
    %191 = vector.shape_cast %167 : vector<32xf32> to vector<1x32xf32>
    %192 = vector.broadcast %191 : vector<1x32xf32> to vector<16x32xf32>
    %193 = arith.addf %190, %192 : vector<16x32xf32>
    %c0_90 = arith.constant 0 : index
    %c0_91 = arith.constant 0 : index
    %c0_92 = arith.constant 0 : index
    %194 = vector.load %arg6[%c0_90, %c0_91, %c0_92] : memref<2x33x64xf32, #tpu.memory_space<vmem>>, vector<1x32x64xf32>
    %195 = vector.shape_cast %194 : vector<1x32x64xf32> to vector<32x64xf32>
    %cst_93 = arith.constant dense<0.000000e+00> : vector<16x64xf32>
    %196 = tpu.matmul %193, %195, %cst_93 {dimension_numbers = #tpu.dot_dimension_numbers<[1], [0], [0], [1], [0, 0, 1, 1], [], []>} : vector<16x32xf32>, vector<32x64xf32>, vector<16x64xf32> -> vector<16x64xf32>
    %c0_94 = arith.constant 0 : index
    %c32_95 = arith.constant 32 : index
    %c0_96 = arith.constant 0 : index
    %197 = vector.load %arg6[%c0_94, %c32_95, %c0_96] : memref<2x33x64xf32, #tpu.memory_space<vmem>>, vector<1x1x64xf32>
    %198 = vector.shape_cast %197 : vector<1x1x64xf32> to vector<64xf32>
    %199 = vector.shape_cast %198 : vector<64xf32> to vector<1x64xf32>
    %200 = vector.broadcast %199 : vector<1x64xf32> to vector<16x64xf32>
    %201 = arith.addf %196, %200 : vector<16x64xf32>
    %cst_97 = arith.constant 5.000000e-01 : f32
    %202 = vector.broadcast %cst_97 : f32 to vector<16x64xf32>
    %203 = arith.mulf %202, %201 : vector<16x64xf32>
    %cst_98 = arith.constant 4.471500e-02 : f32
    %204 = vector.broadcast %cst_98 : f32 to vector<16x64xf32>
    %205 = arith.mulf %204, %201 : vector<16x64xf32>
    %206 = arith.mulf %205, %201 : vector<16x64xf32>
    %207 = arith.mulf %206, %201 : vector<16x64xf32>
    %208 = arith.addf %201, %207 : vector<16x64xf32>
    %cst_99 = arith.constant 0.797884583 : f32
    %209 = vector.broadcast %cst_99 : f32 to vector<16x64xf32>
    %210 = arith.mulf %209, %208 : vector<16x64xf32>
    %211 = math.tanh %210 : vector<16x64xf32>
    %cst_100 = arith.constant 1.000000e+00 : f32
    %212 = vector.broadcast %cst_100 : f32 to vector<16x64xf32>
    %213 = arith.addf %212, %211 : vector<16x64xf32>
    %214 = arith.mulf %203, %213 : vector<16x64xf32>
    %c0_101 = arith.constant 0 : index
    %c0_102 = arith.constant 0 : index
    %c0_103 = arith.constant 0 : index
    %215 = vector.load %arg7[%c0_101, %c0_102, %c0_103] : memref<2x65x32xf32, #tpu.memory_space<vmem>>, vector<1x64x32xf32>
    %216 = vector.shape_cast %215 : vector<1x64x32xf32> to vector<64x32xf32>
    %cst_104 = arith.constant dense<0.000000e+00> : vector<16x32xf32>
    %217 = tpu.matmul %214, %216, %cst_104 {dimension_numbers = #tpu.dot_dimension_numbers<[1], [0], [0], [1], [0, 0, 1, 1], [], []>} : vector<16x64xf32>, vector<64x32xf32>, vector<16x32xf32> -> vector<16x32xf32>
    %c0_105 = arith.constant 0 : index
    %c64 = arith.constant 64 : index
    %c0_106 = arith.constant 0 : index
    %218 = vector.load %arg7[%c0_105, %c64, %c0_106] : memref<2x65x32xf32, #tpu.memory_space<vmem>>, vector<1x1x32xf32>
    %219 = vector.shape_cast %218 : vector<1x1x32xf32> to vector<32xf32>
    %220 = vector.shape_cast %219 : vector<32xf32> to vector<1x32xf32>
    %221 = vector.broadcast %220 : vector<1x32xf32> to vector<16x32xf32>
    %222 = arith.addf %217, %221 : vector<16x32xf32>
    %223 = arith.addf %193, %222 : vector<16x32xf32>
    %c2_107 = arith.constant 2 : index
    %c0_108 = arith.constant 0 : index
    %224 = vector.load %arg8[%c2_107, %c0_108] : memref<10x32xf32, #tpu.memory_space<vmem>>, vector<1x32xf32>
    %225 = vector.shape_cast %224 : vector<1x32xf32> to vector<32xf32>
    %c3_109 = arith.constant 3 : index
    %c0_110 = arith.constant 0 : index
    %226 = vector.load %arg8[%c3_109, %c0_110] : memref<10x32xf32, #tpu.memory_space<vmem>>, vector<1x32xf32>
    %227 = vector.shape_cast %226 : vector<1x32xf32> to vector<32xf32>
    %cst_111 = arith.constant dense<0.000000e+00> : vector<16xf32>
    %228 = vector.multi_reduction <add>, %223, %cst_111 [1] : vector<16x32xf32> to vector<16xf32>
    %229 = vector.shape_cast %228 : vector<16xf32> to vector<16x1xf32>
    %230 = arith.mulf %223, %223 : vector<16x32xf32>
    %cst_112 = arith.constant dense<0.000000e+00> : vector<16xf32>
    %231 = vector.multi_reduction <add>, %230, %cst_112 [1] : vector<16x32xf32> to vector<16xf32>
    %232 = vector.shape_cast %231 : vector<16xf32> to vector<16x1xf32>
    %cst_113 = arith.constant 3.125000e-02 : f32
    %233 = vector.broadcast %cst_113 : f32 to vector<16x1xf32>
    %234 = arith.mulf %229, %233 : vector<16x1xf32>
    %cst_114 = arith.constant 3.125000e-02 : f32
    %235 = vector.broadcast %cst_114 : f32 to vector<16x1xf32>
    %236 = arith.mulf %232, %235 : vector<16x1xf32>
    %237 = arith.mulf %234, %234 : vector<16x1xf32>
    %238 = arith.subf %236, %237 : vector<16x1xf32>
    %cst_115 = arith.constant 0.000000e+00 : f32
    %239 = vector.broadcast %cst_115 : f32 to vector<16x1xf32>
    %240 = arith.maximumf %238, %239 : vector<16x1xf32>
    %241 = vector.broadcast %234 : vector<16x1xf32> to vector<16x32xf32>
    %242 = arith.subf %223, %241 : vector<16x32xf32>
    %cst_116 = arith.constant 9.99999996E-13 : f32
    %243 = vector.broadcast %cst_116 : f32 to vector<16x1xf32>
    %244 = arith.addf %240, %243 : vector<16x1xf32>
    %245 = math.rsqrt %244 : vector<16x1xf32>
    %246 = vector.broadcast %245 : vector<16x1xf32> to vector<16x32xf32>
    %247 = arith.mulf %242, %246 : vector<16x32xf32>
    %248 = vector.shape_cast %225 : vector<32xf32> to vector<1x32xf32>
    %249 = vector.broadcast %248 : vector<1x32xf32> to vector<16x32xf32>
    %250 = arith.mulf %247, %249 : vector<16x32xf32>
    %251 = vector.shape_cast %227 : vector<32xf32> to vector<1x32xf32>
    %252 = vector.broadcast %251 : vector<1x32xf32> to vector<16x32xf32>
    %253 = arith.addf %250, %252 : vector<16x32xf32>
    %cst_117 = arith.constant 0.000000e+00 : f32
    %254 = vector.broadcast %cst_117 : f32 to vector<16x32xf32>
    %c6 = arith.constant 6 : index
    %c0_118 = arith.constant 0 : index
    %c0_119 = arith.constant 0 : index
    %255 = vector.load %arg4[%c6, %c0_118, %c0_119] : memref<12x33x16xf32, #tpu.memory_space<vmem>>, vector<1x32x16xf32>
    %256 = vector.shape_cast %255 : vector<1x32x16xf32> to vector<32x16xf32>
    %cst_120 = arith.constant dense<0.000000e+00> : vector<16x16xf32>
    %257 = tpu.matmul %253, %256, %cst_120 {dimension_numbers = #tpu.dot_dimension_numbers<[1], [0], [0], [1], [0, 0, 1, 1], [], []>} : vector<16x32xf32>, vector<32x16xf32>, vector<16x16xf32> -> vector<16x16xf32>
    %c6_121 = arith.constant 6 : index
    %c32_122 = arith.constant 32 : index
    %c0_123 = arith.constant 0 : index
    %258 = vector.load %arg4[%c6_121, %c32_122, %c0_123] : memref<12x33x16xf32, #tpu.memory_space<vmem>>, vector<1x1x16xf32>
    %259 = vector.shape_cast %258 : vector<1x1x16xf32> to vector<16xf32>
    %260 = vector.shape_cast %259 : vector<16xf32> to vector<1x16xf32>
    %261 = vector.broadcast %260 : vector<1x16xf32> to vector<16x16xf32>
    %262 = arith.addf %257, %261 : vector<16x16xf32>
    %c7 = arith.constant 7 : index
    %c0_124 = arith.constant 0 : index
    %c0_125 = arith.constant 0 : index
    %263 = vector.load %arg4[%c7, %c0_124, %c0_125] : memref<12x33x16xf32, #tpu.memory_space<vmem>>, vector<1x32x16xf32>
    %264 = vector.shape_cast %263 : vector<1x32x16xf32> to vector<32x16xf32>
    %cst_126 = arith.constant dense<0.000000e+00> : vector<16x16xf32>
    %265 = tpu.matmul %253, %264, %cst_126 {dimension_numbers = #tpu.dot_dimension_numbers<[1], [0], [0], [1], [0, 0, 1, 1], [], []>} : vector<16x32xf32>, vector<32x16xf32>, vector<16x16xf32> -> vector<16x16xf32>
    %c7_127 = arith.constant 7 : index
    %c32_128 = arith.constant 32 : index
    %c0_129 = arith.constant 0 : index
    %266 = vector.load %arg4[%c7_127, %c32_128, %c0_129] : memref<12x33x16xf32, #tpu.memory_space<vmem>>, vector<1x1x16xf32>
    %267 = vector.shape_cast %266 : vector<1x1x16xf32> to vector<16xf32>
    %268 = vector.shape_cast %267 : vector<16xf32> to vector<1x16xf32>
    %269 = vector.broadcast %268 : vector<1x16xf32> to vector<16x16xf32>
    %270 = arith.addf %265, %269 : vector<16x16xf32>
    %c8 = arith.constant 8 : index
    %c0_130 = arith.constant 0 : index
    %c0_131 = arith.constant 0 : index
    %271 = vector.load %arg4[%c8, %c0_130, %c0_131] : memref<12x33x16xf32, #tpu.memory_space<vmem>>, vector<1x32x16xf32>
    %272 = vector.shape_cast %271 : vector<1x32x16xf32> to vector<32x16xf32>
    %cst_132 = arith.constant dense<0.000000e+00> : vector<16x16xf32>
    %273 = tpu.matmul %253, %272, %cst_132 {dimension_numbers = #tpu.dot_dimension_numbers<[1], [0], [0], [1], [0, 0, 1, 1], [], []>} : vector<16x32xf32>, vector<32x16xf32>, vector<16x16xf32> -> vector<16x16xf32>
    %c8_133 = arith.constant 8 : index
    %c32_134 = arith.constant 32 : index
    %c0_135 = arith.constant 0 : index
    %274 = vector.load %arg4[%c8_133, %c32_134, %c0_135] : memref<12x33x16xf32, #tpu.memory_space<vmem>>, vector<1x1x16xf32>
    %275 = vector.shape_cast %274 : vector<1x1x16xf32> to vector<16xf32>
    %276 = vector.shape_cast %275 : vector<16xf32> to vector<1x16xf32>
    %277 = vector.broadcast %276 : vector<1x16xf32> to vector<16x16xf32>
    %278 = arith.addf %273, %277 : vector<16x16xf32>
    %cst_136 = arith.constant dense<0.000000e+00> : vector<16x16xf32>
    %279 = tpu.matmul %262, %270, %cst_136 {dimension_numbers = #tpu.dot_dimension_numbers<[1], [1], [0], [0], [0, 0, 1, 0], [], []>} : vector<16x16xf32>, vector<16x16xf32>, vector<16x16xf32> -> vector<16x16xf32>
    %cst_137 = arith.constant 2.500000e-01 : f32
    %280 = vector.broadcast %cst_137 : f32 to vector<16x16xf32>
    %281 = arith.mulf %279, %280 : vector<16x16xf32>
    %282 = arith.addf %281, %70 : vector<16x16xf32>
    %cst_138 = arith.constant dense<0xFF800000> : vector<16xf32>
    %283 = vector.multi_reduction <maximumf>, %282, %cst_138 [1] : vector<16x16xf32> to vector<16xf32>
    %284 = vector.shape_cast %283 : vector<16xf32> to vector<16x1xf32>
    %285 = vector.broadcast %284 : vector<16x1xf32> to vector<16x16xf32>
    %286 = arith.subf %282, %285 : vector<16x16xf32>
    %287 = math.exp %286 : vector<16x16xf32>
    %cst_139 = arith.constant dense<0.000000e+00> : vector<16xf32>
    %288 = vector.multi_reduction <add>, %287, %cst_139 [1] : vector<16x16xf32> to vector<16xf32>
    %289 = vector.shape_cast %288 : vector<16xf32> to vector<16x1xf32>
    %290 = tpu.reciprocal %289 {approx = true} : vector<16x1xf32> -> vector<16x1xf32>
    %291 = vector.broadcast %290 : vector<16x1xf32> to vector<16x16xf32>
    %292 = arith.mulf %287, %291 : vector<16x16xf32>
    %cst_140 = arith.constant dense<0.000000e+00> : vector<16x16xf32>
    %293 = tpu.matmul %292, %278, %cst_140 {dimension_numbers = #tpu.dot_dimension_numbers<[1], [0], [0], [1], [0, 0, 1, 1], [], []>} : vector<16x16xf32>, vector<16x16xf32>, vector<16x16xf32> -> vector<16x16xf32>
    %c2_141 = arith.constant 2 : index
    %c0_142 = arith.constant 0 : index
    %c0_143 = arith.constant 0 : index
    %294 = vector.load %arg5[%c2_141, %c0_142, %c0_143] : memref<4x16x32xf32, #tpu.memory_space<vmem>>, vector<1x16x32xf32>
    %295 = vector.shape_cast %294 : vector<1x16x32xf32> to vector<16x32xf32>
    %cst_144 = arith.constant dense<0.000000e+00> : vector<16x32xf32>
    %296 = tpu.matmul %293, %295, %cst_144 {dimension_numbers = #tpu.dot_dimension_numbers<[1], [0], [0], [1], [0, 0, 1, 1], [], []>} : vector<16x16xf32>, vector<16x32xf32>, vector<16x32xf32> -> vector<16x32xf32>
    %297 = arith.addf %254, %296 : vector<16x32xf32>
    %c9 = arith.constant 9 : index
    %c0_145 = arith.constant 0 : index
    %c0_146 = arith.constant 0 : index
    %298 = vector.load %arg4[%c9, %c0_145, %c0_146] : memref<12x33x16xf32, #tpu.memory_space<vmem>>, vector<1x32x16xf32>
    %299 = vector.shape_cast %298 : vector<1x32x16xf32> to vector<32x16xf32>
    %cst_147 = arith.constant dense<0.000000e+00> : vector<16x16xf32>
    %300 = tpu.matmul %253, %299, %cst_147 {dimension_numbers = #tpu.dot_dimension_numbers<[1], [0], [0], [1], [0, 0, 1, 1], [], []>} : vector<16x32xf32>, vector<32x16xf32>, vector<16x16xf32> -> vector<16x16xf32>
    %c9_148 = arith.constant 9 : index
    %c32_149 = arith.constant 32 : index
    %c0_150 = arith.constant 0 : index
    %301 = vector.load %arg4[%c9_148, %c32_149, %c0_150] : memref<12x33x16xf32, #tpu.memory_space<vmem>>, vector<1x1x16xf32>
    %302 = vector.shape_cast %301 : vector<1x1x16xf32> to vector<16xf32>
    %303 = vector.shape_cast %302 : vector<16xf32> to vector<1x16xf32>
    %304 = vector.broadcast %303 : vector<1x16xf32> to vector<16x16xf32>
    %305 = arith.addf %300, %304 : vector<16x16xf32>
    %c10 = arith.constant 10 : index
    %c0_151 = arith.constant 0 : index
    %c0_152 = arith.constant 0 : index
    %306 = vector.load %arg4[%c10, %c0_151, %c0_152] : memref<12x33x16xf32, #tpu.memory_space<vmem>>, vector<1x32x16xf32>
    %307 = vector.shape_cast %306 : vector<1x32x16xf32> to vector<32x16xf32>
    %cst_153 = arith.constant dense<0.000000e+00> : vector<16x16xf32>
    %308 = tpu.matmul %253, %307, %cst_153 {dimension_numbers = #tpu.dot_dimension_numbers<[1], [0], [0], [1], [0, 0, 1, 1], [], []>} : vector<16x32xf32>, vector<32x16xf32>, vector<16x16xf32> -> vector<16x16xf32>
    %c10_154 = arith.constant 10 : index
    %c32_155 = arith.constant 32 : index
    %c0_156 = arith.constant 0 : index
    %309 = vector.load %arg4[%c10_154, %c32_155, %c0_156] : memref<12x33x16xf32, #tpu.memory_space<vmem>>, vector<1x1x16xf32>
    %310 = vector.shape_cast %309 : vector<1x1x16xf32> to vector<16xf32>
    %311 = vector.shape_cast %310 : vector<16xf32> to vector<1x16xf32>
    %312 = vector.broadcast %311 : vector<1x16xf32> to vector<16x16xf32>
    %313 = arith.addf %308, %312 : vector<16x16xf32>
    %c11 = arith.constant 11 : index
    %c0_157 = arith.constant 0 : index
    %c0_158 = arith.constant 0 : index
    %314 = vector.load %arg4[%c11, %c0_157, %c0_158] : memref<12x33x16xf32, #tpu.memory_space<vmem>>, vector<1x32x16xf32>
    %315 = vector.shape_cast %314 : vector<1x32x16xf32> to vector<32x16xf32>
    %cst_159 = arith.constant dense<0.000000e+00> : vector<16x16xf32>
    %316 = tpu.matmul %253, %315, %cst_159 {dimension_numbers = #tpu.dot_dimension_numbers<[1], [0], [0], [1], [0, 0, 1, 1], [], []>} : vector<16x32xf32>, vector<32x16xf32>, vector<16x16xf32> -> vector<16x16xf32>
    %c11_160 = arith.constant 11 : index
    %c32_161 = arith.constant 32 : index
    %c0_162 = arith.constant 0 : index
    %317 = vector.load %arg4[%c11_160, %c32_161, %c0_162] : memref<12x33x16xf32, #tpu.memory_space<vmem>>, vector<1x1x16xf32>
    %318 = vector.shape_cast %317 : vector<1x1x16xf32> to vector<16xf32>
    %319 = vector.shape_cast %318 : vector<16xf32> to vector<1x16xf32>
    %320 = vector.broadcast %319 : vector<1x16xf32> to vector<16x16xf32>
    %321 = arith.addf %316, %320 : vector<16x16xf32>
    %cst_163 = arith.constant dense<0.000000e+00> : vector<16x16xf32>
    %322 = tpu.matmul %305, %313, %cst_163 {dimension_numbers = #tpu.dot_dimension_numbers<[1], [1], [0], [0], [0, 0, 1, 0], [], []>} : vector<16x16xf32>, vector<16x16xf32>, vector<16x16xf32> -> vector<16x16xf32>
    %cst_164 = arith.constant 2.500000e-01 : f32
    %323 = vector.broadcast %cst_164 : f32 to vector<16x16xf32>
    %324 = arith.mulf %322, %323 : vector<16x16xf32>
    %325 = arith.addf %324, %70 : vector<16x16xf32>
    %cst_165 = arith.constant dense<0xFF800000> : vector<16xf32>
    %326 = vector.multi_reduction <maximumf>, %325, %cst_165 [1] : vector<16x16xf32> to vector<16xf32>
    %327 = vector.shape_cast %326 : vector<16xf32> to vector<16x1xf32>
    %328 = vector.broadcast %327 : vector<16x1xf32> to vector<16x16xf32>
    %329 = arith.subf %325, %328 : vector<16x16xf32>
    %330 = math.exp %329 : vector<16x16xf32>
    %cst_166 = arith.constant dense<0.000000e+00> : vector<16xf32>
    %331 = vector.multi_reduction <add>, %330, %cst_166 [1] : vector<16x16xf32> to vector<16xf32>
    %332 = vector.shape_cast %331 : vector<16xf32> to vector<16x1xf32>
    %333 = tpu.reciprocal %332 {approx = true} : vector<16x1xf32> -> vector<16x1xf32>
    %334 = vector.broadcast %333 : vector<16x1xf32> to vector<16x16xf32>
    %335 = arith.mulf %330, %334 : vector<16x16xf32>
    %cst_167 = arith.constant dense<0.000000e+00> : vector<16x16xf32>
    %336 = tpu.matmul %335, %321, %cst_167 {dimension_numbers = #tpu.dot_dimension_numbers<[1], [0], [0], [1], [0, 0, 1, 1], [], []>} : vector<16x16xf32>, vector<16x16xf32>, vector<16x16xf32> -> vector<16x16xf32>
    %c3_168 = arith.constant 3 : index
    %c0_169 = arith.constant 0 : index
    %c0_170 = arith.constant 0 : index
    %337 = vector.load %arg5[%c3_168, %c0_169, %c0_170] : memref<4x16x32xf32, #tpu.memory_space<vmem>>, vector<1x16x32xf32>
    %338 = vector.shape_cast %337 : vector<1x16x32xf32> to vector<16x32xf32>
    %cst_171 = arith.constant dense<0.000000e+00> : vector<16x32xf32>
    %339 = tpu.matmul %336, %338, %cst_171 {dimension_numbers = #tpu.dot_dimension_numbers<[1], [0], [0], [1], [0, 0, 1, 1], [], []>} : vector<16x16xf32>, vector<16x32xf32>, vector<16x32xf32> -> vector<16x32xf32>
    %340 = arith.addf %297, %339 : vector<16x32xf32>
    %c9_172 = arith.constant 9 : index
    %c0_173 = arith.constant 0 : index
    %341 = vector.load %arg8[%c9_172, %c0_173] : memref<10x32xf32, #tpu.memory_space<vmem>>, vector<1x32xf32>
    %342 = vector.shape_cast %341 : vector<1x32xf32> to vector<32xf32>
    %343 = vector.shape_cast %342 : vector<32xf32> to vector<1x32xf32>
    %344 = vector.broadcast %343 : vector<1x32xf32> to vector<16x32xf32>
    %345 = arith.addf %340, %344 : vector<16x32xf32>
    %346 = arith.addf %253, %345 : vector<16x32xf32>
    %c5_174 = arith.constant 5 : index
    %c0_175 = arith.constant 0 : index
    %347 = vector.load %arg8[%c5_174, %c0_175] : memref<10x32xf32, #tpu.memory_space<vmem>>, vector<1x32xf32>
    %348 = vector.shape_cast %347 : vector<1x32xf32> to vector<32xf32>
    %c6_176 = arith.constant 6 : index
    %c0_177 = arith.constant 0 : index
    %349 = vector.load %arg8[%c6_176, %c0_177] : memref<10x32xf32, #tpu.memory_space<vmem>>, vector<1x32xf32>
    %350 = vector.shape_cast %349 : vector<1x32xf32> to vector<32xf32>
    %cst_178 = arith.constant dense<0.000000e+00> : vector<16xf32>
    %351 = vector.multi_reduction <add>, %346, %cst_178 [1] : vector<16x32xf32> to vector<16xf32>
    %352 = vector.shape_cast %351 : vector<16xf32> to vector<16x1xf32>
    %353 = arith.mulf %346, %346 : vector<16x32xf32>
    %cst_179 = arith.constant dense<0.000000e+00> : vector<16xf32>
    %354 = vector.multi_reduction <add>, %353, %cst_179 [1] : vector<16x32xf32> to vector<16xf32>
    %355 = vector.shape_cast %354 : vector<16xf32> to vector<16x1xf32>
    %cst_180 = arith.constant 3.125000e-02 : f32
    %356 = vector.broadcast %cst_180 : f32 to vector<16x1xf32>
    %357 = arith.mulf %352, %356 : vector<16x1xf32>
    %cst_181 = arith.constant 3.125000e-02 : f32
    %358 = vector.broadcast %cst_181 : f32 to vector<16x1xf32>
    %359 = arith.mulf %355, %358 : vector<16x1xf32>
    %360 = arith.mulf %357, %357 : vector<16x1xf32>
    %361 = arith.subf %359, %360 : vector<16x1xf32>
    %cst_182 = arith.constant 0.000000e+00 : f32
    %362 = vector.broadcast %cst_182 : f32 to vector<16x1xf32>
    %363 = arith.maximumf %361, %362 : vector<16x1xf32>
    %364 = vector.broadcast %357 : vector<16x1xf32> to vector<16x32xf32>
    %365 = arith.subf %346, %364 : vector<16x32xf32>
    %cst_183 = arith.constant 9.99999996E-13 : f32
    %366 = vector.broadcast %cst_183 : f32 to vector<16x1xf32>
    %367 = arith.addf %363, %366 : vector<16x1xf32>
    %368 = math.rsqrt %367 : vector<16x1xf32>
    %369 = vector.broadcast %368 : vector<16x1xf32> to vector<16x32xf32>
    %370 = arith.mulf %365, %369 : vector<16x32xf32>
    %371 = vector.shape_cast %348 : vector<32xf32> to vector<1x32xf32>
    %372 = vector.broadcast %371 : vector<1x32xf32> to vector<16x32xf32>
    %373 = arith.mulf %370, %372 : vector<16x32xf32>
    %374 = vector.shape_cast %350 : vector<32xf32> to vector<1x32xf32>
    %375 = vector.broadcast %374 : vector<1x32xf32> to vector<16x32xf32>
    %376 = arith.addf %373, %375 : vector<16x32xf32>
    %c1_184 = arith.constant 1 : index
    %c0_185 = arith.constant 0 : index
    %c0_186 = arith.constant 0 : index
    %377 = vector.load %arg6[%c1_184, %c0_185, %c0_186] : memref<2x33x64xf32, #tpu.memory_space<vmem>>, vector<1x32x64xf32>
    %378 = vector.shape_cast %377 : vector<1x32x64xf32> to vector<32x64xf32>
    %cst_187 = arith.constant dense<0.000000e+00> : vector<16x64xf32>
    %379 = tpu.matmul %376, %378, %cst_187 {dimension_numbers = #tpu.dot_dimension_numbers<[1], [0], [0], [1], [0, 0, 1, 1], [], []>} : vector<16x32xf32>, vector<32x64xf32>, vector<16x64xf32> -> vector<16x64xf32>
    %c1_188 = arith.constant 1 : index
    %c32_189 = arith.constant 32 : index
    %c0_190 = arith.constant 0 : index
    %380 = vector.load %arg6[%c1_188, %c32_189, %c0_190] : memref<2x33x64xf32, #tpu.memory_space<vmem>>, vector<1x1x64xf32>
    %381 = vector.shape_cast %380 : vector<1x1x64xf32> to vector<64xf32>
    %382 = vector.shape_cast %381 : vector<64xf32> to vector<1x64xf32>
    %383 = vector.broadcast %382 : vector<1x64xf32> to vector<16x64xf32>
    %384 = arith.addf %379, %383 : vector<16x64xf32>
    %cst_191 = arith.constant 5.000000e-01 : f32
    %385 = vector.broadcast %cst_191 : f32 to vector<16x64xf32>
    %386 = arith.mulf %385, %384 : vector<16x64xf32>
    %cst_192 = arith.constant 4.471500e-02 : f32
    %387 = vector.broadcast %cst_192 : f32 to vector<16x64xf32>
    %388 = arith.mulf %387, %384 : vector<16x64xf32>
    %389 = arith.mulf %388, %384 : vector<16x64xf32>
    %390 = arith.mulf %389, %384 : vector<16x64xf32>
    %391 = arith.addf %384, %390 : vector<16x64xf32>
    %cst_193 = arith.constant 0.797884583 : f32
    %392 = vector.broadcast %cst_193 : f32 to vector<16x64xf32>
    %393 = arith.mulf %392, %391 : vector<16x64xf32>
    %394 = math.tanh %393 : vector<16x64xf32>
    %cst_194 = arith.constant 1.000000e+00 : f32
    %395 = vector.broadcast %cst_194 : f32 to vector<16x64xf32>
    %396 = arith.addf %395, %394 : vector<16x64xf32>
    %397 = arith.mulf %386, %396 : vector<16x64xf32>
    %c1_195 = arith.constant 1 : index
    %c0_196 = arith.constant 0 : index
    %c0_197 = arith.constant 0 : index
    %398 = vector.load %arg7[%c1_195, %c0_196, %c0_197] : memref<2x65x32xf32, #tpu.memory_space<vmem>>, vector<1x64x32xf32>
    %399 = vector.shape_cast %398 : vector<1x64x32xf32> to vector<64x32xf32>
    %cst_198 = arith.constant dense<0.000000e+00> : vector<16x32xf32>
    %400 = tpu.matmul %397, %399, %cst_198 {dimension_numbers = #tpu.dot_dimension_numbers<[1], [0], [0], [1], [0, 0, 1, 1], [], []>} : vector<16x64xf32>, vector<64x32xf32>, vector<16x32xf32> -> vector<16x32xf32>
    %c1_199 = arith.constant 1 : index
    %c64_200 = arith.constant 64 : index
    %c0_201 = arith.constant 0 : index
    %401 = vector.load %arg7[%c1_199, %c64_200, %c0_201] : memref<2x65x32xf32, #tpu.memory_space<vmem>>, vector<1x1x32xf32>
    %402 = vector.shape_cast %401 : vector<1x1x32xf32> to vector<32xf32>
    %403 = vector.shape_cast %402 : vector<32xf32> to vector<1x32xf32>
    %404 = vector.broadcast %403 : vector<1x32xf32> to vector<16x32xf32>
    %405 = arith.addf %400, %404 : vector<16x32xf32>
    %406 = arith.addf %376, %405 : vector<16x32xf32>
    %c7_202 = arith.constant 7 : index
    %c0_203 = arith.constant 0 : index
    %407 = vector.load %arg8[%c7_202, %c0_203] : memref<10x32xf32, #tpu.memory_space<vmem>>, vector<1x32xf32>
    %408 = vector.shape_cast %407 : vector<1x32xf32> to vector<32xf32>
    %c8_204 = arith.constant 8 : index
    %c0_205 = arith.constant 0 : index
    %409 = vector.load %arg8[%c8_204, %c0_205] : memref<10x32xf32, #tpu.memory_space<vmem>>, vector<1x32xf32>
    %410 = vector.shape_cast %409 : vector<1x32xf32> to vector<32xf32>
    %cst_206 = arith.constant dense<0.000000e+00> : vector<16xf32>
    %411 = vector.multi_reduction <add>, %406, %cst_206 [1] : vector<16x32xf32> to vector<16xf32>
    %412 = vector.shape_cast %411 : vector<16xf32> to vector<16x1xf32>
    %413 = arith.mulf %406, %406 : vector<16x32xf32>
    %cst_207 = arith.constant dense<0.000000e+00> : vector<16xf32>
    %414 = vector.multi_reduction <add>, %413, %cst_207 [1] : vector<16x32xf32> to vector<16xf32>
    %415 = vector.shape_cast %414 : vector<16xf32> to vector<16x1xf32>
    %cst_208 = arith.constant 3.125000e-02 : f32
    %416 = vector.broadcast %cst_208 : f32 to vector<16x1xf32>
    %417 = arith.mulf %412, %416 : vector<16x1xf32>
    %cst_209 = arith.constant 3.125000e-02 : f32
    %418 = vector.broadcast %cst_209 : f32 to vector<16x1xf32>
    %419 = arith.mulf %415, %418 : vector<16x1xf32>
    %420 = arith.mulf %417, %417 : vector<16x1xf32>
    %421 = arith.subf %419, %420 : vector<16x1xf32>
    %cst_210 = arith.constant 0.000000e+00 : f32
    %422 = vector.broadcast %cst_210 : f32 to vector<16x1xf32>
    %423 = arith.maximumf %421, %422 : vector<16x1xf32>
    %424 = vector.broadcast %417 : vector<16x1xf32> to vector<16x32xf32>
    %425 = arith.subf %406, %424 : vector<16x32xf32>
    %cst_211 = arith.constant 9.99999996E-13 : f32
    %426 = vector.broadcast %cst_211 : f32 to vector<16x1xf32>
    %427 = arith.addf %423, %426 : vector<16x1xf32>
    %428 = math.rsqrt %427 : vector<16x1xf32>
    %429 = vector.broadcast %428 : vector<16x1xf32> to vector<16x32xf32>
    %430 = arith.mulf %425, %429 : vector<16x32xf32>
    %431 = vector.shape_cast %408 : vector<32xf32> to vector<1x32xf32>
    %432 = vector.broadcast %431 : vector<1x32xf32> to vector<16x32xf32>
    %433 = arith.mulf %430, %432 : vector<16x32xf32>
    %434 = vector.shape_cast %410 : vector<32xf32> to vector<1x32xf32>
    %435 = vector.broadcast %434 : vector<1x32xf32> to vector<16x32xf32>
    %436 = arith.addf %433, %435 : vector<16x32xf32>
    %437 = vector.shape_cast %436 : vector<16x32xf32> to vector<2x8x32xf32>
    %438 = vector.extract_strided_slice %437 {offsets = [0, 0, 0], sizes = [2, 1, 32], strides = [1, 1, 1]} : vector<2x8x32xf32> to vector<2x1x32xf32>
    %439 = vector.shape_cast %438 : vector<2x1x32xf32> to vector<2x32xf32>
    %c0_212 = arith.constant 0 : index
    %440 = memref.load %arg0[%c0_212] : memref<1xi32, #tpu.memory_space<smem>>
    %cst_213 = arith.constant 0.000000e+00 : f32
    %441 = vector.broadcast %cst_213 : f32 to vector<2x11xf32>
    %c0_214 = arith.constant 0 : index
    %c0_215 = arith.constant 0 : index
    %c0_216 = arith.constant 0 : index
    %442 = vector.load %arg9[%c0_214, %c0_215, %c0_216] : memref<4x33x11xf32, #tpu.memory_space<vmem>>, vector<1x32x11xf32>
    %443 = vector.shape_cast %442 : vector<1x32x11xf32> to vector<32x11xf32>
    %cst_217 = arith.constant dense<0.000000e+00> : vector<2x11xf32>
    %444 = tpu.matmul %439, %443, %cst_217 {dimension_numbers = #tpu.dot_dimension_numbers<[1], [0], [0], [1], [0, 0, 1, 1], [], []>} : vector<2x32xf32>, vector<32x11xf32>, vector<2x11xf32> -> vector<2x11xf32>
    %c0_218 = arith.constant 0 : index
    %c32_219 = arith.constant 32 : index
    %c0_220 = arith.constant 0 : index
    %445 = vector.load %arg9[%c0_218, %c32_219, %c0_220] : memref<4x33x11xf32, #tpu.memory_space<vmem>>, vector<1x1x11xf32>
    %446 = vector.shape_cast %445 : vector<1x1x11xf32> to vector<11xf32>
    %447 = vector.shape_cast %446 : vector<11xf32> to vector<1x11xf32>
    %448 = vector.broadcast %447 : vector<1x11xf32> to vector<2x11xf32>
    %449 = arith.addf %444, %448 : vector<2x11xf32>
    %c0_i32_221 = arith.constant 0 : i32
    %450 = arith.cmpi eq, %440, %c0_i32_221 : i32
    %451 = arith.select %450, %449, %441 : vector<2x11xf32>
    %c1_222 = arith.constant 1 : index
    %c0_223 = arith.constant 0 : index
    %c0_224 = arith.constant 0 : index
    %452 = vector.load %arg9[%c1_222, %c0_223, %c0_224] : memref<4x33x11xf32, #tpu.memory_space<vmem>>, vector<1x32x11xf32>
    %453 = vector.shape_cast %452 : vector<1x32x11xf32> to vector<32x11xf32>
    %cst_225 = arith.constant dense<0.000000e+00> : vector<2x11xf32>
    %454 = tpu.matmul %439, %453, %cst_225 {dimension_numbers = #tpu.dot_dimension_numbers<[1], [0], [0], [1], [0, 0, 1, 1], [], []>} : vector<2x32xf32>, vector<32x11xf32>, vector<2x11xf32> -> vector<2x11xf32>
    %c1_226 = arith.constant 1 : index
    %c32_227 = arith.constant 32 : index
    %c0_228 = arith.constant 0 : index
    %455 = vector.load %arg9[%c1_226, %c32_227, %c0_228] : memref<4x33x11xf32, #tpu.memory_space<vmem>>, vector<1x1x11xf32>
    %456 = vector.shape_cast %455 : vector<1x1x11xf32> to vector<11xf32>
    %457 = vector.shape_cast %456 : vector<11xf32> to vector<1x11xf32>
    %458 = vector.broadcast %457 : vector<1x11xf32> to vector<2x11xf32>
    %459 = arith.addf %454, %458 : vector<2x11xf32>
    %c1_i32 = arith.constant 1 : i32
    %460 = arith.cmpi eq, %440, %c1_i32 : i32
    %461 = arith.select %460, %459, %451 : vector<2x11xf32>
    %c2_229 = arith.constant 2 : index
    %c0_230 = arith.constant 0 : index
    %c0_231 = arith.constant 0 : index
    %462 = vector.load %arg9[%c2_229, %c0_230, %c0_231] : memref<4x33x11xf32, #tpu.memory_space<vmem>>, vector<1x32x11xf32>
    %463 = vector.shape_cast %462 : vector<1x32x11xf32> to vector<32x11xf32>
    %cst_232 = arith.constant dense<0.000000e+00> : vector<2x11xf32>
    %464 = tpu.matmul %439, %463, %cst_232 {dimension_numbers = #tpu.dot_dimension_numbers<[1], [0], [0], [1], [0, 0, 1, 1], [], []>} : vector<2x32xf32>, vector<32x11xf32>, vector<2x11xf32> -> vector<2x11xf32>
    %c2_233 = arith.constant 2 : index
    %c32_234 = arith.constant 32 : index
    %c0_235 = arith.constant 0 : index
    %465 = vector.load %arg9[%c2_233, %c32_234, %c0_235] : memref<4x33x11xf32, #tpu.memory_space<vmem>>, vector<1x1x11xf32>
    %466 = vector.shape_cast %465 : vector<1x1x11xf32> to vector<11xf32>
    %467 = vector.shape_cast %466 : vector<11xf32> to vector<1x11xf32>
    %468 = vector.broadcast %467 : vector<1x11xf32> to vector<2x11xf32>
    %469 = arith.addf %464, %468 : vector<2x11xf32>
    %c2_i32 = arith.constant 2 : i32
    %470 = arith.cmpi eq, %440, %c2_i32 : i32
    %471 = arith.select %470, %469, %461 : vector<2x11xf32>
    %c3_236 = arith.constant 3 : index
    %c0_237 = arith.constant 0 : index
    %c0_238 = arith.constant 0 : index
    %472 = vector.load %arg9[%c3_236, %c0_237, %c0_238] : memref<4x33x11xf32, #tpu.memory_space<vmem>>, vector<1x32x11xf32>
    %473 = vector.shape_cast %472 : vector<1x32x11xf32> to vector<32x11xf32>
    %cst_239 = arith.constant dense<0.000000e+00> : vector<2x11xf32>
    %474 = tpu.matmul %439, %473, %cst_239 {dimension_numbers = #tpu.dot_dimension_numbers<[1], [0], [0], [1], [0, 0, 1, 1], [], []>} : vector<2x32xf32>, vector<32x11xf32>, vector<2x11xf32> -> vector<2x11xf32>
    %c3_240 = arith.constant 3 : index
    %c32_241 = arith.constant 32 : index
    %c0_242 = arith.constant 0 : index
    %475 = vector.load %arg9[%c3_240, %c32_241, %c0_242] : memref<4x33x11xf32, #tpu.memory_space<vmem>>, vector<1x1x11xf32>
    %476 = vector.shape_cast %475 : vector<1x1x11xf32> to vector<11xf32>
    %477 = vector.shape_cast %476 : vector<11xf32> to vector<1x11xf32>
    %478 = vector.broadcast %477 : vector<1x11xf32> to vector<2x11xf32>
    %479 = arith.addf %474, %478 : vector<2x11xf32>
    %c3_i32 = arith.constant 3 : i32
    %480 = arith.cmpi eq, %440, %c3_i32 : i32
    %481 = arith.select %480, %479, %471 : vector<2x11xf32>
    %cst_243 = arith.constant 5.000000e-01 : f32
    %482 = vector.broadcast %cst_243 : f32 to vector<2x11xf32>
    %483 = arith.mulf %482, %481 : vector<2x11xf32>
    %484 = math.tanh %483 : vector<2x11xf32>
    %cst_244 = arith.constant 1.000000e+00 : f32
    %485 = vector.broadcast %cst_244 : f32 to vector<2x11xf32>
    %486 = arith.addf %484, %485 : vector<2x11xf32>
    %cst_245 = arith.constant 5.000000e-01 : f32
    %487 = vector.broadcast %cst_245 : f32 to vector<2x11xf32>
    %488 = arith.mulf %487, %486 : vector<2x11xf32>
    %489 = tpu.concatenate %439, %481, %488 in 1 : vector<2x32xf32>, vector<2x11xf32>, vector<2x11xf32> -> vector<2x54xf32>
    %c0_246 = arith.constant 0 : index
    %c0_247 = arith.constant 0 : index
    %490 = vector.load %arg10[%c0_246, %c0_247] : memref<2x54xf32, #tpu.memory_space<vmem>>, vector<2x54xf32>
    tpu.vector_store %arg10[%c0_246, %c0_247], %489 {strides = array<i32>} : memref<2x54xf32, #tpu.memory_space<vmem>>, vector<2x54xf32>,
    return
  }
}

</mosaic_0001>

<bundles_post_ra>
// kernel: tpu_custom_call.1
= control target key start
LH: loop header
LB: loop body
LE: loop exit
PB: predicated region body
PF: predicated region fallthrough
CT: control target
= control target key end

     0   :  { %v4447_v2 = vmov 0   ;;  %s5190_s0 = inlined_call_operand.<no memory space> [shape: s32[1], index: 0, kind: input, shape index: {}]   ;;  %s5191_s1 = inlined_call_operand.vmem [shape: s32[2,16,1], index: 1, kind: input, shape index: {}]   ;;  %s5192_s2 = inlined_call_operand.vmem [shape: s32[1,16], index: 2, kind: input, shape index: {}]   ;;  %s5193_s3 = inlined_call_operand.vmem [shape: f32[76,32], index: 3, kind: input, shape index: {}]   ;;  %s5194_s4 = inlined_call_operand.vmem [shape: f32[12,33,16], index: 4, kind: input, shape index: {}]   ;;  %s5195_s5 = inlined_call_operand.vmem [shape: f32[4,16,32], index: 5, kind: input, shape index: {}]   ;;  %s5196_s6 = inlined_call_operand.vmem [shape: f32[2,33,64], index: 6, kind: input, shape index: {}]   ;;  %s5197_s7 = inlined_call_operand.vmem [shape: f32[2,65,32], index: 7, kind: input, shape index: {}]   ;;  %s5198_s8 = inlined_call_operand.vmem [shape: f32[10,32], index: 8, kind: input, shape index: {}]   ;;  %s5199_s9 = inlined_call_operand.vmem [shape: f32[4,33,11], index: 9, kind: input, shape index: {}]   ;;  %s5200_s10 = inlined_call_operand.hbm [shape: f32[2,54], index: 10, kind: output, shape index: {}]  }
   0x1   :  { %v37_v0 = vld [vmem:[%s5191_s1] sm:$0xff]  ;;  %4359 = vset.pattern.permute.xlu0 %v4447_v2  ;;  %v57_v3 = vld [vmem:[%s5193_s3 + $0x8] sm:$0xff]  ;;  %v58_v4 = vld [vmem:[%s5193_s3 + $0x10] sm:$0xff]  ;;  %4360 = vset.pattern.permute.xlu1 %v4447_v2 }
   0x2   :  { %v56_v1 = vld [vmem:[%s5193_s3] sm:$0xff]  ;;  %v59_v5 = vld [vmem:[%s5193_s3 + $0x18] sm:$0xff]  ;;  %45 = vperm.xlu0 %4359, %v37_v0  }
   0x3   :  { %v4108_v6 = vpack.c.bf16 %v57_v3, %v56_v1  ;;  %v4112_v7 = vpack.c.bf16 %v59_v5, %v58_v4 }
   0x4   :  { %16 = vsyncpa [#allocation4], 0  ;;  %v38_v8 = vld [vmem:[%s5191_s1 + $0x8] sm:$0xff]  ;;  %v60_v9 = vld [vmem:[%s5193_s3 + $0x20] sm:$0xff]  ;;  %v42_v17 = vlaneseq  ;;  %vm88_vm2 = vcmask 457728   ;;  %v4448_v20 = vmov 0.0  }
   0x5   :  { %v61_v10 = vld [vmem:[%s5193_s3 + $0x28] sm:$0xff]  ;;  %4109 = vmatprep.subr.bf16.mxu0 %v4108_v6  ;;  %v3392_v12 = vld [vmem:[%s5191_s1 + $0x10] sm:$0xff]  ;;  %v3393_v13 = vld [vmem:[%s5191_s1 + $0x18] sm:$0xff]  ;;  %vm174_vm7 = vcmask 261120   ;;  %vm517_vm8 = vcmask 130048   ;;  %vm243_vm11 = vcmask 64512  }
   0x6   :  { %4111 = vmatpush3.bf16.msra.mxu0 %v4108_v6  ;;  %48 = vperm.xlu0 %4359, %v38_v8   ;;  %v4116_v11 = vpack.c.bf16 %v61_v10, %v60_v9  ;;  %vm64_vm0 = vcmp.gt.s32.totalorder %v3392_v12, 0  ;;  %vm65_vm1 = vcmp.gt.s32.totalorder %v3393_v13, 0  ;;  %v62_v15 = vld [vmem:[%s5193_s3 + $0x30] sm:$0xff]  ;;  %v43_v18 = vand.u32 127, %v42_v17  ;;  %v3396_v26 = vld [vmem:[%s5193_s3 + $0x49] ss:$0 sm:$0xff]  ;;  %vm4659_vm9 = vmpackc.low %vm517_vm8, %vm517_vm8 }
   0x7   :  { %4113 = vmatprep.subr.bf16.mxu0 %v4112_v7  ;;  %v68_v14 = vsel %vm64_vm0, 1, %v4447_v2  ;;  %v69_v16 = vsel %vm65_vm1, 1, %v4447_v2  ;;  %v3397_v27 = vld [vmem:[%s5193_s3 + $0x48] ss:$0 sm:$0xff]  ;;  %v63_v28 = vld [vmem:[%s5193_s3 + $0x38] sm:$0xff]  ;;  %v257_v43 = vld [vmem:[%s5194_s4] sm:$0xff] }
   0x8   :  { %71 = vperm.xlu1 %4360, %v68_v14   ;;  %v258_v44 = vld [vmem:[%s5194_s4 + $0x8] sm:$0xff]  ;;  %v3413_v46 = vld [vmem:[%s5194_s4 + $0x50] sm:$0xff]  ;;  %v3414_v47 = vld [vmem:[%s5194_s4 + $0x58] sm:$0xff]  ;;  %vm1504_vm1 = vcmask 523264   ;;  %p3100_p0 = scmp.eq.s32.totalorder %s5190_s0, 0  ;;  %p3185_p1 = scmp.eq.s32.totalorder %s5190_s0, 1 }
   0x9   :  { %v4120_v45 = vpack.c.bf16 %v258_v44, %v257_v43  ;;  %v4136_v48 = vpack.c.bf16 %v3414_v47, %v3413_v46  ;;  %v259_v49 = vld [vmem:[%s5194_s4 + $0x10] sm:$0xff]  ;;  %v260_v50 = vld [vmem:[%s5194_s4 + $0x18] sm:$0xff]  ;;  %v3415_v52 = vld [vmem:[%s5194_s4 + $0x60] sm:$0xff]  ;;  %p3270_p2 = scmp.eq.s32.totalorder %s5190_s0, 2  ;;  %p3355_p3 = scmp.eq.s32.totalorder %s5190_s0, 3 }
   0xa   :  { %4115 = vmatpush3.bf16.msra.mxu0 %v4112_v7  ;;  %v4124_v51 = vpack.c.bf16 %v260_v50, %v259_v49  ;;  %v3416_v53 = vld [vmem:[%s5194_s4 + $0x68] sm:$0xff]  ;;  %v3406_v56 = vld [vmem:[%s5194_s4 + $0x30] sm:$0xff]  ;;  %s3101_s15 = scalar_select %p3100_p0, 1, 0 }
   0xb   :  { %4117 = vmatprep.subr.bf16.mxu0 %v4116_v11  ;;  %4121 = vmatprep.subr.bf16.mxu1 %v4120_v45  ;;  %v4140_v54 = vpack.c.bf16 %v3416_v53, %v3415_v52  ;;  %v3405_v55 = vld [vmem:[%s5194_s4 + $0x28] sm:$0xff]  ;;  %s3186_s16 = scalar_select %p3185_p1, 1, 0 }
   0xc   :  { %74 = vperm.xlu1 %4360, %v69_v16   ;;  %4123 = vmatpush3.bf16.msra.mxu1 %v4120_v45  ;;  %v4128_v57 = vpack.c.bf16 %v3406_v56, %v3405_v55  ;;  %v3400_v13 = vld [vmem:[%s5193_s3 + $0x4a] ss:$0 sm:$0xff]  ;;  %v3427_v55 = vld [vmem:[%s5194_s4 + $0x78] sm:$0xff]  ;;  %v3428_v56 = vld [vmem:[%s5194_s4 + $0x80] sm:$0xff]  ;;  %s3271_s17 = scalar_select %p3270_p2, 1, 0 }
   0xd   :  { %4125 = vmatprep.subr.bf16.mxu1 %v4124_v51  ;;  %s4455_s25 = smov 32   ;;  %s4457_s26 = smov [#allocation3]  }
   0xe   :  { %4119 = vmatpush3.bf16.msra.mxu0 %v4116_v11 }
   0xf   :  { %3783 = vmatprep.subr.mxu0 %v62_v15 }
  0x10   :  { %4127 = vmatpush3.bf16.msra.mxu1 %v4124_v51  ;;  %v3410_v51 = vld [vmem:[%s5194_s4 + $0x48] ss:$0 sm:$0xff] }
  0x11   :  { %4129 = vmatprep.subr.bf16.mxu1 %v4128_v57 }
  0x12   :  { %3784 = vmatpush3.msra.mxu0 %v62_v15  ;;  %v3401_v15 = vld [vmem:[%s5193_s3 + $0x4b] ss:$0 sm:$0xff]  ;;  %s4451_s3 = smov 8  }
  0x13   :  { %4137 = vmatprep.subr.bf16.mxu0 %v4136_v48 }
  0x81   :  { %v46_v19 = vpop.permute.xlu0 %45 }
  0x82   :  { %vm50_vm3 = vcmp.eq.s32.totalorder %v46_v19, %v43_v18 }
  0x83   :  { %v3394_v21 = vsel %vm50_vm3, 1.0, %v4448_v20  ;;  %vm3026_vm3 = vcmask 1041409  }
  0x84   :  { %3785 = vmatprep.mubr.msk.f32.mxu0 %vm88_vm2, %v3394_v21 }
  0x85   :  { %v49_v22 = vpop.permute.xlu0 %48 }
  0x86   :  { %vm51_vm4 = vcmp.eq.s32.totalorder %v49_v22, %v43_v18 }
  0x87   :  { %v3395_v23 = vsel %vm51_vm4, 1.0, %v4448_v20  ;;  %v72_v24 = vpop.permute.xlu1 %71 }
  0x88   :  { %3786 = vmatmul.mubr.msk.f32.vlgmr.msra.gmra.mrb[0].mxu0 %vm88_vm2, %v3395_v23  ;;  %vm76_vm6 = vcmp.eq.s32.totalorder %v72_v24, 1  ;;  %v3407_v23 = vld [vmem:[%s5194_s4 + $0x38] sm:$0xff]  ;;  %v3408_v24 = vld [vmem:[%s5194_s4 + $0x40] sm:$0xff]  ;;  %vm4454_vm2 = vmmov 0  }
  0x89   :  { %v86_v31 = vsel %vm76_vm6, %v3396_v26, %v3397_v27  ;;  %4139 = vmatpush3.bf16.msra.mxu0 %v4136_v48 }
  0x8a   :  { %4141 = vmatprep.subr.bf16.mxu0 %v4140_v54 }
  0x8b   :  { %v75_v25 = vpop.permute.xlu1 %74 }
  0x8c   :  { %vm77_vm5 = vcmp.eq.s32.totalorder %v75_v25, 1 }
  0x8d   :  { %v87_v29 = vsel %vm77_vm5, %v3396_v26, %v3397_v27  ;;  %4143 = vmatpush3.bf16.msra.mxu0 %v4140_v54  ;;  %v4132_v27 = vpack.c.bf16 %v3408_v24, %v3407_v23 }
 0x15b   :  { %v3787_v30 = vpop.f32.mrb[0].mxu0 }
 0x15c   :  { %v167_v32 = vadd.f32 %v3787_v30, %v63_v28  ;;  %v161_v33 = vpop.f32.mrb[1].mxu0 }
 0x15d   :  { %v162_v34 = vadd.f32 %v161_v33, %v63_v28  ;;  %v4631_v28 = vshrl.u32 %v42_v17, 7 }
 0x15e   :  { %v4562_v35 = vadd.f32 %v167_v32, %v87_v29  ;;  %v4449_v29 = vmov 1983009808  }
 0x15f   :  { %v170_v36 = vadd.f32 %v162_v34, %v86_v31  ;;  %v225_v30 = vunpack.c.l.s4 %v4449_v29  ;;  %v4450_v31 = vmov 1934713408   ;;  %v223_v33 = vcombine.low %v4631_v28, %v4631_v28 }
 0x160   :  { %v178_v37 = vsel %vm174_vm7, %v4562_v35, 0.0  ;;  %v182_v41 = vmul.f32 %v4562_v35, %v4562_v35  ;;  %v233_v32 = vunpack.c.l.s4 %v4450_v31 }
 0x161   :  { %179 = vadd.xlane.f32.xlu1 %v178_v37  ;;  %v175_v38 = vsel %vm174_vm7, %v170_v36, 0.0  ;;  %v181_v39 = vmul.f32 %v170_v36, %v170_v36  ;;  %v226_v34 = vunpack.c.0.s8 %v225_v30 }
 0x162   :  { %176 = vadd.xlane.f32.xlu0 %v175_v38  ;;  %v186_v42 = vsel %vm174_vm7, %v182_v41, 0.0  ;;  %v3418_v41 = vld [vmem:[%s5194_s4 + $0x70] ss:$0 sm:$0xff] }
 0x163   :  { %v183_v40 = vsel %vm174_vm7, %v181_v39, 0.0 }
 0x166   :  { %184 = vadd.xlane.f32.xlu0 %v183_v40 }
 0x16a   :  { %187 = vadd.xlane.f32.xlu0 %v186_v42  ;;  %v3402_v42 = vld [vmem:[%s5194_s4 + $0x20] ss:$0 sm:$0xff] }
 0x1ee   :  { %v180_v60 = vpop.xlane.xlu1 %179 }
 0x1ef   :  { %v177_v58 = vpop.xlane.xlu0 %176  ;;  %v190_v62 = vmul.f32 0.03125, %v180_v60  ;;  %v4154_v60 = vpack.c.bf16 %v3428_v56, %v3427_v55  ;;  %v3437_v55 = vld [vmem:[%s5194_s4 + $0xb0] sm:$0xff]  ;;  %v3438_v56 = vld [vmem:[%s5194_s4 + $0xb8] sm:$0xff] }
 0x1f0   :  { %v189_v59 = vmul.f32 0.03125, %v177_v58 }
 0x1f1   :  { %v194_v4 = vmul.f32 %v190_v62, %v190_v62  ;;  %v200_v16 = vsub.f32 %v4562_v35, %v190_v62  ;;  %v234_v35 = vunpack.c.0.s8 %v233_v32  ;;  %v3430_v62 = vld [vmem:[%s5194_s4 + $0x90] sm:$0xff] }
 0x1f2   :  { %v193_v63 = vmul.f32 %v189_v59, %v189_v59  ;;  %v199_v11 = vsub.f32 %v170_v36, %v189_v59  ;;  %v229_v36 = vsub.s32 %v226_v34, %v4631_v28 }
 0x1f3   :  { %v185_v61 = vpop.xlane.xlu0 %184  ;;  %v237_v38 = vsub.s32 %v234_v35, %v4631_v28 }
 0x1f4   :  { %v191_v0 = vmul.f32 0.03125, %v185_v61  ;;  %v230_v37 = vrot.slane %v223_v33, %v229_v36  ;;  %v3429_v61 = vld [vmem:[%s5194_s4 + $0x88] sm:$0xff] }
 0x1f5   :  { %v3448_v33 = vld [vmem:[%s5194_s4 + $0xe8] ss:$0 sm:$0xff] }
 0x1f6   :  { %v195_v1 = vsub.f32 %v191_v0, %v193_v63  ;;  %v231_v39 = vcombine.low %v230_v37, %v230_v37  ;;  %v4158_v0 = vpack.c.bf16 %v3430_v62, %v3429_v61 }
 0x1f7   :  { %v188_v3 = vpop.xlane.xlu0 %187 }
 0x1f8   :  { %v197_v5 = vmax.f32 %v195_v1, 0.0  ;;  %v192_v6 = vmul.f32 0.03125, %v188_v3  ;;  %v4637_v40 = vrot.slane %v231_v39, %v237_v38  ;;  %v3443_v1 = vld [vmem:[%s5194_s4 + $0xc8] sm:$0xff]  ;;  %v3444_v3 = vld [vmem:[%s5194_s4 + $0xd0] sm:$0xff] }
 0x1fa   :  { %v201_v7 = vadd.f32 1e-12, %v197_v5  ;;  %v196_v8 = vsub.f32 %v192_v6, %v194_v4  ;;  %v240_v17 = vcombine.high %v4637_v40, %v4637_v40  ;;  %v4170_v4 = vpack.c.bf16 %v3444_v3, %v3443_v1  ;;  %v3445_v5 = vld [vmem:[%s5194_s4 + $0xd8] sm:$0xff]  ;;  %v3446_v6 = vld [vmem:[%s5194_s4 + $0xe0] sm:$0xff] }
 0x1fc   :  { %4361 = vrsqrt.f32 %v201_v7  ;;  %v198_v9 = vmax.f32 %v196_v8, 0.0  ;;  %241 = vrot.lane.b32.xlu1 %v240_v17, %s4451_s3  ;;  %v219_v7 = vld [vmem:[%s5192_s2] sm:$0x1]  ;;  %v4174_v8 = vpack.c.bf16 %v3446_v6, %v3445_v5  ;;  %s3384_s3 = sshll.u32 %s4457_s26, 4  ;;  %s3385_s3 = int_to_ptr.vmem [resolvable:$true] %s3384_s3 }
 0x1fd   :  { %vm220_vm10 = vcmp.gt.s32.totalorder %v219_v7, 0  ;;  %p4428_p5 = scmp.lt.s32.totalorder %s3385_s3, %s3385_s3 }
 0x1fe   :  { %v202_v10 = vadd.f32 1e-12, %v198_v9  ;;  %v250_v9 = vsub.s32 0, %v4631_v28 }
 0x200   :  { %4363 = vrsqrt.f32 %v202_v10  ;;  %v247_v10 = vsel %vm220_vm10, 1, %v4447_v2  ;;  %vm3376_vm10 = vcmask 435200  }
 0x206   :  { %v4362_v12 = vpop.eup %4361 }
 0x207   :  { %v205_v14 = vmul.f32 %v4362_v12, %v199_v11  ;;  %v251_v11 = vrot.slane %v247_v10, %v250_v9  ;;  %v239_v12 = vcombine.low %v4637_v40, %v4637_v40 }
 0x209   :  { %v211_v18 = vmul.f32 %v3400_v13, %v205_v14  ;;  %vm252_vm12 = vcmp.eq.s32.totalorder %v251_v11, 1 }
 0x20a   :  { %v4364_v19 = vpop.eup %4363 }
 0x20b   :  { %v4608_v21 = vadd.f32 %v3401_v15, %v211_v18  ;;  %v206_v22 = vmul.f32 %v4364_v19, %v200_v16  ;;  %v4452_v16 = vmov -10000.0  }
 0x20d   :  { %v212_v25 = vmul.f32 %v3400_v13, %v206_v22  ;;  %3796 = vmatprep.mubr.msk.f32.mxu1 %vm174_vm7, %v4608_v21  ;;  %3818 = vmatprep.mubr.msk.f32.mxu0 %vm174_vm7, %v4608_v21 }
 0x20f   :  { %v4620_v26 = vadd.f32 %v3401_v15, %v212_v25 }
 0x211   :  { %3797 = vmatmul.mubr.msk.f32.vlgmr.msra.gmra.mrb[0].mxu1 %vm174_vm7, %v4620_v26  ;;  %3819 = vmatmul.mubr.msk.f32.vlgmr.msra.gmra.mrb[2].mxu0 %vm174_vm7, %v4620_v26 }
 0x212   :  { %4131 = vmatpush3.bf16.msra.mxu1 %v4128_v57  ;;  %3807 = vmatprep.mubr.msk.f32.mxu1 %vm174_vm7, %v4608_v21 }
 0x213   :  { %4133 = vmatprep.subr.bf16.mxu1 %v4132_v27 }
 0x216   :  { %4135 = vmatpush3.bf16.msra.mxu1 %v4132_v27  ;;  %v3432_v27 = vld [vmem:[%s5194_s4 + $0x98] ss:$0 sm:$0xff] }
 0x219   :  { %3808 = vmatmul.mubr.msk.f32.vlgmr.msra.gmra.mrb[2].mxu1 %vm174_vm7, %v4620_v26 }
 0x26e   :  { %v242_v13 = vpop.permute.xlu1 %241 }
 0x26f   :  { %v244_v14 = vsel %vm243_vm11, %v239_v12, %v242_v13 }
 0x270   :  { %vm245_vm13 = vcmp.eq.s32.totalorder %v244_v14, 0  ;;  %vm246_vm14 = vcmp.eq.s32.totalorder %v244_v14, 1 }
 0x271   :  { %vm253_vm15 = vmand %vm245_vm13, %vm252_vm12 }
 0x272   :  { %vm254_vm0 = vmand %vm246_vm14, %vm252_vm12  ;;  %v4701_v18 = vsel %vm253_vm15, 0.0, %v4452_v16 }
 0x273   :  { %v4703_v23 = vsel %vm254_vm0, 0.0, %v4452_v16 }
 0x2e4   :  { %v3798_v43 = vpop.f32.mrb[0].mxu1  ;;  %v3820_v44 = vpop.f32.mrb[2].mxu0 }
 0x2e5   :  { %v514_v45 = vadd.f32 %v3820_v44, %v3418_v41  ;;  %v338_v46 = vpop.f32.mrb[1].mxu1  ;;  %v508_v47 = vpop.f32.mrb[3].mxu0  ;;  %v344_v63 = vadd.f32 %v3798_v43, %v3402_v42 }
 0x2e6   :  { %v339_v48 = vadd.f32 %v3402_v42, %v338_v46  ;;  %v509_v49 = vadd.f32 %v3418_v41, %v508_v47 }
 0x2e8   :  { %v4150_v50 = vpack.c.bf16 %v514_v45, %v509_v49  ;;  %3825 = vmatprep.mubr.msk.f32.mxu1 %vm517_vm8, %v339_v48  ;;  %v3435_v48 = vld [vmem:[%s5194_s4 + $0xa0] sm:$0xff]  ;;  %v3436_v49 = vld [vmem:[%s5194_s4 + $0xa8] sm:$0xff] }
 0x2ea   :  { %4151 = vmatprep.subr.bf16.mxu0 %v4150_v50 }
 0x2eb   :  { %4153 = vmatpush3.bf16.msra.mxu0 %v4150_v50  ;;  %v4162_v50 = vpack.c.bf16 %v3436_v49, %v3435_v48 }
 0x2ec   :  { %v3809_v52 = vpop.f32.mrb[2].mxu1 }
 0x2ed   :  { %v429_v53 = vadd.f32 %v3809_v52, %v3410_v51  ;;  %v423_v54 = vpop.f32.mrb[3].mxu1  ;;  %4163 = vmatprep.subr.bf16.mxu0 %v4162_v50 }
 0x2ee   :  { %v424_v57 = vadd.f32 %v3410_v51, %v423_v54 }
 0x2f0   :  { %v4144_v59 = vpack.c.bf16 %v429_v53, %v424_v57 }
 0x2f2   :  { %4146 = vmatprep.subr.msk.bf16.mxu1 %vm4659_vm9, %v4144_v59 }
 0x2f3   :  { %4149 = vmatpush3.bf16.xpose.msk.msra.mxu1 %vm4659_vm9, %v4144_v59 }
 0x2f4   :  { %4155 = vmatprep.subr.bf16.mxu1 %v4154_v60 }
 0x2fa   :  { %3826 = vmatmul.mubr.msk.f32.vlgmr.msra.gmra.mrb[4].mxu1 %vm517_vm8, %v344_v63 }
 0x2fb   :  { %4157 = vmatpush3.bf16.msra.mxu1 %v4154_v60  ;;  %3843 = vmatprep.mubr.msk.f32.mxu1 %vm174_vm7, %v4608_v21  ;;  %v4166_v60 = vpack.c.bf16 %v3438_v56, %v3437_v55  ;;  %v1385_v56 = vld [vmem:[%s5196_s6 + $0x10] sm:$0xff] }
 0x2fc   :  { %4159 = vmatprep.subr.bf16.mxu1 %v4158_v0 }
 0x2ff   :  { %4161 = vmatpush3.bf16.msra.mxu1 %v4158_v0  ;;  %v3440_v0 = vld [vmem:[%s5194_s4 + $0xc0] ss:$0 sm:$0xff] }
 0x300   :  { %4171 = vmatprep.subr.bf16.mxu1 %v4170_v4 }
 0x302   :  { %3844 = vmatmul.mubr.msk.f32.vlgmr.msra.gmra.mrb[6].mxu1 %vm174_vm7, %v4620_v26 }
 0x303   :  { %4173 = vmatpush3.bf16.msra.mxu1 %v4170_v4  ;;  %3865 = vmatprep.mubr.msk.f32.mxu1 %vm174_vm7, %v4608_v21 }
 0x304   :  { %4175 = vmatprep.subr.bf16.mxu1 %v4174_v8 }
 0x307   :  { %4177 = vmatpush3.bf16.msra.mxu1 %v4174_v8 }
 0x30a   :  { %3866 = vmatmul.mubr.msk.f32.vlgmr.msra.gmra.mrb[8].mxu1 %vm174_vm7, %v4620_v26 }
 0x3cd   :  { %v3827_v15 = vpop.f32.mrb[4].mxu1 }
 0x3ce   :  { %v596_v2 = vpop.f32.mrb[5].mxu1  ;;  %v606_v19 = vmul.f32 0.25, %v3827_v15 }
 0x3cf   :  { %v605_v22 = vmul.f32 0.25, %v596_v2 }
 0x3d0   :  { %v608_v28 = vadd.f32 %v606_v19, %v4703_v23 }
 0x3d1   :  { %v607_v24 = vadd.f32 %v605_v22, %v4701_v18 }
 0x3d2   :  { %v612_v32 = vsel %vm517_vm8, %v608_v28, -inf }
 0x3d3   :  { %v609_v25 = vsel %vm517_vm8, %v607_v24, -inf }
 0x3d4   :  { %610 = vmax.xlane.f32.xlu0 %v609_v25 }
 0x3d5   :  { %v3845_v29 = vpop.f32.mrb[6].mxu1 }
 0x3d6   :  { %v796_v30 = vadd.f32 %v3845_v29, %v3432_v27  ;;  %v790_v31 = vpop.f32.mrb[7].mxu1 }
 0x3d7   :  { %v791_v61 = vadd.f32 %v3432_v27, %v790_v31  ;;  %v3458_v31 = vld [vmem:[%s5195_s5 + $0x18] sm:$0xff] }
 0x3d8   :  { %613 = vmax.xlane.f32.xlu0 %v612_v32 }
 0x3dd   :  { %v3867_v34 = vpop.f32.mrb[8].mxu1 }
 0x3de   :  { %v966_v35 = vadd.f32 %v3867_v34, %v3448_v33  ;;  %v960_v36 = vpop.f32.mrb[9].mxu1 }
 0x3df   :  { %v961_v37 = vadd.f32 %v3448_v33, %v960_v36 }
 0x3e1   :  { %v4184_v38 = vpack.c.bf16 %v966_v35, %v961_v37 }
 0x3e3   :  { %4185 = vmatprep.subr.bf16.mxu1 %v4184_v38 }
 0x3e4   :  { %4187 = vmatpush3.bf16.msra.mxu1 %v4184_v38 }
 0x461   :  { %v611_v39 = vpop.xlane.xlu0 %610 }
 0x462   :  { %v615_v40 = vsub.f32 %v607_v24, %v611_v39  ;;  %v712_v39 = vld [vmem:[%s5195_s5] sm:$0xff] }
 0x464   :  { %v617_v17 = vmul.f32 1.442695, %v615_v40  ;;  %v713_v40 = vld [vmem:[%s5195_s5 + $0x8] sm:$0xff] }
 0x465   :  { %v614_v41 = vpop.xlane.xlu0 %613 }
 0x466   :  { %4365 = vpow2.f32 %v617_v17  ;;  %v616_v42 = vsub.f32 %v608_v28, %v614_v41  ;;  %v4192_v17 = vpack.c.bf16 %v713_v40, %v712_v39  ;;  %v1497_v40 = vld [vmem:[%s5197_s7 + $0x30] sm:$0xff] }
 0x468   :  { %v619_v43 = vmul.f32 1.442695, %v616_v42 }
 0x46a   :  { %4367 = vpow2.f32 %v619_v43  ;;  %v3463_v43 = vld [vmem:[%s5198_s8 + $0x4] ss:$0 sm:$0xff] }
 0x470   :  { %v4366_v44 = vpop.eup %4365 }
 0x471   :  { %v621_v45 = vsel %vm517_vm8, %v4366_v44, 0.0 }
 0x472   :  { %622 = vadd.xlane.f32.xlu0 %v621_v45 }
 0x474   :  { %v4368_v46 = vpop.eup %4367 }
 0x475   :  { %v624_v47 = vsel %vm517_vm8, %v4368_v46, 0.0 }
 0x476   :  { %625 = vadd.xlane.f32.xlu0 %v624_v47 }
 0x4ff   :  { %v623_v51 = vpop.xlane.xlu0 %622 }
 0x500   :  { %4369 = vrcp.f32 %v623_v51 }
 0x503   :  { %v626_v52 = vpop.xlane.xlu0 %625 }
 0x504   :  { %4371 = vrcp.f32 %v626_v52 }
 0x50a   :  { %v4370_v53 = vpop.eup %4369 }
 0x50b   :  { %v629_v54 = vmul.f32 %v4370_v53, %v4366_v44 }
 0x50d   :  { %3832 = vmatprep.mubr.msk.f32.mxu0 %vm517_vm8, %v629_v54 }
 0x50e   :  { %v4372_v57 = vpop.eup %4371 }
 0x50f   :  { %v630_v59 = vmul.f32 %v4372_v57, %v4368_v46 }
 0x511   :  { %3833 = vmatmul.mubr.msk.f32.vlgmr.msra.gmra.mrb[4].mxu0 %vm517_vm8, %v630_v59  ;;  %v1386_v59 = vld [vmem:[%s5196_s6 + $0x18] sm:$0xff] }
 0x512   :  { %4165 = vmatpush3.bf16.msra.mxu0 %v4162_v50  ;;  %3854 = vmatprep.mubr.msk.f32.mxu0 %vm174_vm7, %v4608_v21 }
 0x513   :  { %4167 = vmatprep.subr.bf16.mxu0 %v4166_v60 }
 0x516   :  { %4169 = vmatpush3.bf16.msra.mxu0 %v4166_v60  ;;  %v4200_v60 = vpack.c.bf16 %v1386_v59, %v1385_v56 }
 0x519   :  { %3855 = vmatmul.mubr.msk.f32.vlgmr.msra.gmra.mrb[6].mxu0 %vm174_vm7, %v4620_v26 }
 0x51a   :  { %3872 = vmatprep.mubr.msk.f32.mxu0 %vm517_vm8, %v791_v61 }
 0x5e4   :  { %v3834_v62 = vpop.f32.mrb[4].mxu0 }
 0x5e5   :  { %v703_v63 = vpop.f32.mrb[5].mxu0 }
 0x5ec   :  { %v3856_v1 = vpop.f32.mrb[6].mxu0 }
 0x5ed   :  { %v881_v3 = vadd.f32 %v3856_v1, %v3440_v0  ;;  %v875_v4 = vpop.f32.mrb[7].mxu0 }
 0x5ee   :  { %v876_v5 = vadd.f32 %v3440_v0, %v875_v4 }
 0x5f0   :  { %v4178_v6 = vpack.c.bf16 %v881_v3, %v876_v5 }
 0x5f2   :  { %4180 = vmatprep.subr.msk.bf16.mxu0 %vm4659_vm9, %v4178_v6 }
 0x5f3   :  { %4183 = vmatpush3.bf16.xpose.msk.msra.mxu0 %vm4659_vm9, %v4178_v6 }
 0x5fa   :  { %3873 = vmatmul.mubr.msk.f32.vlgmr.msra.gmra.mrb[8].mxu0 %vm517_vm8, %v796_v30  ;;  %v3457_v30 = vld [vmem:[%s5195_s5 + $0x10] sm:$0xff] }
 0x5fb   :  { %v4188_v32 = vpack.c.bf16 %v3458_v31, %v3457_v30  ;;  %v1491_v31 = vld [vmem:[%s5197_s7] sm:$0xff] }
 0x5fd   :  { %4189 = vmatprep.subr.bf16.mxu0 %v4188_v32 }
 0x5fe   :  { %4191 = vmatpush3.bf16.msra.mxu0 %v4188_v32  ;;  %v1492_v32 = vld [vmem:[%s5197_s7 + $0x8] sm:$0xff] }
 0x5ff   :  { %4193 = vmatprep.subr.bf16.mxu0 %v4192_v17 }
 0x6cd   :  { %v3874_v7 = vpop.f32.mrb[8].mxu0 }
 0x6ce   :  { %v1057_v8 = vmul.f32 0.25, %v3874_v7  ;;  %v1047_v9 = vpop.f32.mrb[9].mxu0 }
 0x6cf   :  { %v1056_v10 = vmul.f32 0.25, %v1047_v9 }
 0x6d0   :  { %v1059_v11 = vadd.f32 %v1057_v8, %v4703_v23 }
 0x6d1   :  { %v1058_v12 = vadd.f32 %v1056_v10, %v4701_v18 }
 0x6d2   :  { %v1063_v13 = vsel %vm517_vm8, %v1059_v11, -inf }
 0x6d3   :  { %1064 = vmax.xlane.f32.xlu0 %v1063_v13  ;;  %v1060_v14 = vsel %vm517_vm8, %v1058_v12, -inf }
 0x6d4   :  { %1061 = vmax.xlane.f32.xlu1 %v1060_v14 }
 0x760   :  { %v1065_v15 = vpop.xlane.xlu0 %1064 }
 0x761   :  { %v1067_v16 = vsub.f32 %v1059_v11, %v1065_v15  ;;  %v1062_v2 = vpop.xlane.xlu1 %1061 }
 0x762   :  { %v1066_v19 = vsub.f32 %v1058_v12, %v1062_v2 }
 0x763   :  { %v1070_v22 = vmul.f32 1.442695, %v1067_v16  ;;  %v3464_v16 = vld [vmem:[%s5198_s8] ss:$0 sm:$0xff] }
 0x764   :  { %v1068_v24 = vmul.f32 1.442695, %v1066_v19  ;;  %v3465_v19 = vld [vmem:[%s5198_s8 + $0x1] ss:$0 sm:$0xff] }
 0x766   :  { %4373 = vpow2.f32 %v1068_v24 }
 0x767   :  { %4375 = vpow2.f32 %v1070_v22 }
 0x770   :  { %v4374_v25 = vpop.eup %4373 }
 0x771   :  { %v1072_v27 = vsel %vm517_vm8, %v4374_v25, 0.0  ;;  %v4376_v28 = vpop.eup %4375 }
 0x772   :  { %1073 = vadd.xlane.f32.xlu0 %v1072_v27  ;;  %v1075_v29 = vsel %vm517_vm8, %v4376_v28, 0.0 }
 0x776   :  { %1076 = vadd.xlane.f32.xlu0 %v1075_v29 }
 0x7ff   :  { %v1074_v33 = vpop.xlane.xlu0 %1073 }
 0x800   :  { %4377 = vrcp.f32 %v1074_v33  ;;  %v4204_v33 = vpack.c.bf16 %v1492_v32, %v1491_v31  ;;  %v3482_v31 = vld [vmem:[%s5194_s4 + $0x118] sm:$0xff]  ;;  %v3483_v32 = vld [vmem:[%s5194_s4 + $0x120] sm:$0xff] }
 0x803   :  { %v1077_v34 = vpop.xlane.xlu0 %1076 }
 0x804   :  { %4379 = vrcp.f32 %v1077_v34  ;;  %v1493_v34 = vld [vmem:[%s5197_s7 + $0x10] sm:$0xff] }
 0x80a   :  { %v4378_v35 = vpop.eup %4377 }
 0x80b   :  { %v1080_v36 = vmul.f32 %v4378_v35, %v4374_v25  ;;  %v1494_v35 = vld [vmem:[%s5197_s7 + $0x18] sm:$0xff] }
 0x80d   :  { %3879 = vmatprep.mubr.msk.f32.mxu1 %vm517_vm8, %v1080_v36  ;;  %v1495_v36 = vld [vmem:[%s5197_s7 + $0x20] sm:$0xff] }
 0x80e   :  { %v4380_v37 = vpop.eup %4379 }
 0x80f   :  { %v1081_v38 = vmul.f32 %v4380_v37, %v4376_v28  ;;  %v4208_v37 = vpack.c.bf16 %v1494_v35, %v1493_v34 }
 0x811   :  { %3880 = vmatmul.mubr.msk.f32.vlgmr.msra.gmra.mrb[10].mxu1 %vm517_vm8, %v1081_v38  ;;  %v1496_v38 = vld [vmem:[%s5197_s7 + $0x28] sm:$0xff] }
 0x812   :  { %v4212_v39 = vpack.c.bf16 %v1496_v38, %v1495_v36 }
 0x8e4   :  { %v3881_v41 = vpop.f32.mrb[10].mxu1 }
 0x8e5   :  { %v1154_v42 = vpop.f32.mrb[11].mxu1 }
 0x8e6   :  { %3886 = vmatprep.mubr.msk.f32.mxu0 %vm517_vm8, %v1154_v42  ;;  %v3466_v42 = vld [vmem:[%s5196_s6 + $0x20] ss:$0 sm:$0xff] }
 0x8e7   :  { %3887 = vmatmul.mubr.msk.f32.vlgmr.msra.gmra.mrb[10].mxu0 %vm517_vm8, %v3881_v41 }
 0x8e8   :  { %4195 = vmatpush3.bf16.msra.mxu0 %v4192_v17  ;;  %3893 = vmatprep.mubr.msk.f32.mxu0 %vm517_vm8, %v703_v63  ;;  %v1498_v17 = vld [vmem:[%s5197_s7 + $0x38] sm:$0xff] }
 0x8e9   :  { %4205 = vmatprep.subr.bf16.mxu0 %v4204_v33  ;;  %v4216_v41 = vpack.c.bf16 %v1498_v17, %v1497_v40 }
 0x8ef   :  { %3894 = vmatmul.mubr.msk.f32.vlgmr.msra.gmra.mrb[10].mxu0 %vm517_vm8, %v3834_v62 }
 0x8f0   :  { %4207 = vmatpush3.bf16.msra.mxu0 %v4204_v33  ;;  %v4228_v33 = vpack.c.bf16 %v3483_v32, %v3482_v31  ;;  %v3524_v31 = vld [vmem:[%s5194_s4 + $0x1c8] sm:$0xff]  ;;  %v3525_v32 = vld [vmem:[%s5194_s4 + $0x1d0] sm:$0xff] }
 0x8f1   :  { %4209 = vmatprep.subr.bf16.mxu0 %v4208_v37 }
 0x8f4   :  { %4211 = vmatpush3.bf16.msra.mxu0 %v4208_v37 }
 0x8f5   :  { %4213 = vmatprep.subr.bf16.mxu0 %v4212_v39 }
 0x8f8   :  { %4215 = vmatpush3.bf16.msra.mxu0 %v4212_v39 }
 0x8f9   :  { %4217 = vmatprep.subr.bf16.mxu0 %v4216_v41 }
 0x8fc   :  { %4219 = vmatpush3.bf16.msra.mxu0 %v4216_v41 }
 0x9c2   :  { %v3895_v44 = vpop.f32.mrb[10].mxu0 }
 0x9c3   :  { %v1334_v45 = vadd.f32 %v3895_v44, %v3463_v43  ;;  %v1319_v46 = vpop.f32.mrb[11].mxu0 }
 0x9c4   :  { %v1333_v47 = vadd.f32 %v3463_v43, %v1319_v46 }
 0x9c5   :  { %v1336_v48 = vadd.f32 %v1334_v45, %v4620_v26  ;;  %v1383_v26 = vld [vmem:[%s5196_s6] sm:$0xff] }
 0x9c6   :  { %v1335_v49 = vadd.f32 %v1333_v47, %v4608_v21  ;;  %v1384_v21 = vld [vmem:[%s5196_s6 + $0x8] sm:$0xff] }
 0x9c7   :  { %v1342_v50 = vsel %vm174_vm7, %v1336_v48, 0.0  ;;  %v1346_v54 = vmul.f32 %v1336_v48, %v1336_v48  ;;  %v4196_v57 = vpack.c.bf16 %v1384_v21, %v1383_v26 }
 0x9c8   :  { %1343 = vadd.xlane.f32.xlu0 %v1342_v50  ;;  %v1339_v51 = vsel %vm174_vm7, %v1335_v49, 0.0  ;;  %v1345_v52 = vmul.f32 %v1335_v49, %v1335_v49 }
 0x9c9   :  { %v1350_v55 = vsel %vm174_vm7, %v1346_v54, 0.0  ;;  %4197 = vmatprep.subr.bf16.mxu1 %v4196_v57 }
 0x9ca   :  { %v1347_v53 = vsel %vm174_vm7, %v1345_v52, 0.0  ;;  %4199 = vmatpush3.bf16.msra.mxu1 %v4196_v57 }
 0x9cb   :  { %4201 = vmatprep.subr.bf16.mxu1 %v4200_v60 }
 0x9cc   :  { %1340 = vadd.xlane.f32.xlu0 %v1339_v51 }
 0x9ce   :  { %4203 = vmatpush3.bf16.msra.mxu1 %v4200_v60 }
 0x9d0   :  { %1348 = vadd.xlane.f32.xlu0 %v1347_v53 }
 0x9d4   :  { %1351 = vadd.xlane.f32.xlu0 %v1350_v55 }
 0xa55   :  { %v1344_v61 = vpop.xlane.xlu0 %1343 }
 0xa56   :  { %v1354_v1 = vmul.f32 0.03125, %v1344_v61 }
 0xa58   :  { %v1358_v7 = vmul.f32 %v1354_v1, %v1354_v1  ;;  %v1364_v22 = vsub.f32 %v1336_v48, %v1354_v1 }
 0xa59   :  { %v1341_v62 = vpop.xlane.xlu0 %1340 }
 0xa5a   :  { %v1353_v63 = vmul.f32 0.03125, %v1341_v62 }
 0xa5c   :  { %v1357_v3 = vmul.f32 %v1353_v63, %v1353_v63  ;;  %v1363_v14 = vsub.f32 %v1335_v49, %v1353_v63 }
 0xa5d   :  { %v1349_v0 = vpop.xlane.xlu0 %1348 }
 0xa5e   :  { %v1355_v4 = vmul.f32 0.03125, %v1349_v0  ;;  %v3469_v0 = vld [vmem:[%s5197_s7 + $0x40] ss:$0 sm:$0xff] }
 0xa60   :  { %v1359_v5 = vsub.f32 %v1355_v4, %v1357_v3 }
 0xa61   :  { %v1352_v6 = vpop.xlane.xlu0 %1351 }
 0xa62   :  { %v1361_v8 = vmax.f32 %v1359_v5, 0.0  ;;  %v1356_v9 = vmul.f32 0.03125, %v1352_v6 }
 0xa64   :  { %v1365_v10 = vadd.f32 1e-12, %v1361_v8  ;;  %v1360_v11 = vsub.f32 %v1356_v9, %v1358_v7 }
 0xa66   :  { %4381 = vrsqrt.f32 %v1365_v10  ;;  %v1362_v12 = vmax.f32 %v1360_v11, 0.0 }
 0xa68   :  { %v1366_v13 = vadd.f32 1e-12, %v1362_v12 }
 0xa6a   :  { %4383 = vrsqrt.f32 %v1366_v13 }
 0xa70   :  { %v4382_v15 = vpop.eup %4381 }
 0xa71   :  { %v1369_v2 = vmul.f32 %v4382_v15, %v1363_v14  ;;  %v3474_v14 = vld [vmem:[%s5194_s4 + $0xf0] sm:$0xff]  ;;  %v3475_v15 = vld [vmem:[%s5194_s4 + $0xf8] sm:$0xff] }
 0xa73   :  { %v1375_v24 = vmul.f32 %v3464_v16, %v1369_v2  ;;  %v3490_v2 = vld [vmem:[%s5194_s4 + $0x140] sm:$0xff] }
 0xa74   :  { %v4384_v25 = vpop.eup %4383 }
 0xa75   :  { %v1370_v27 = vmul.f32 %v4384_v25, %v1364_v22  ;;  %v1381_v28 = vadd.f32 %v3465_v19, %v1375_v24  ;;  %v3476_v24 = vld [vmem:[%s5194_s4 + $0x100] sm:$0xff]  ;;  %v3477_v25 = vld [vmem:[%s5194_s4 + $0x108] sm:$0xff] }
 0xa77   :  { %v1376_v29 = vmul.f32 %v3464_v16, %v1370_v27  ;;  %3904 = vmatprep.mubr.msk.f32.mxu1 %vm174_vm7, %v1381_v28  ;;  %v4220_v16 = vpack.c.bf16 %v3475_v15, %v3474_v14  ;;  %v4224_v27 = vpack.c.bf16 %v3477_v25, %v3476_v24  ;;  %v3506_v14 = vld [vmem:[%s5194_s4 + $0x168] sm:$0xff]  ;;  %v3507_v15 = vld [vmem:[%s5194_s4 + $0x170] sm:$0xff]  ;;  %v3509_v24 = vld [vmem:[%s5194_s4 + $0x180] sm:$0xff] }
 0xa79   :  { %v1382_v30 = vadd.f32 %v3465_v19, %v1376_v29  ;;  %v3491_v19 = vld [vmem:[%s5194_s4 + $0x148] sm:$0xff]  ;;  %4221 = vmatprep.subr.bf16.mxu1 %v4220_v16  ;;  %v3493_v29 = vld [vmem:[%s5194_s4 + $0x158] sm:$0xff] }
 0xa7a   :  { %v4236_v22 = vpack.c.bf16 %v3491_v19, %v3490_v2  ;;  %v4254_v19 = vpack.c.bf16 %v3507_v15, %v3506_v14  ;;  %v3519_v14 = vld [vmem:[%s5194_s4 + $0x1b0] ss:$0 sm:$0xff] }
 0xa7b   :  { %3905 = vmatmul.mubr.msk.f32.vlgmr.msra.gmra.mrb[12].mxu1 %vm174_vm7, %v1382_v30 }
 0xa7c   :  { %4223 = vmatpush3.bf16.msra.mxu1 %v4220_v16  ;;  %4237 = vmatprep.subr.bf16.mxu0 %v4236_v22 }
 0xa7d   :  { %4225 = vmatprep.subr.bf16.mxu1 %v4224_v27 }
 0xa80   :  { %4227 = vmatpush3.bf16.msra.mxu1 %v4224_v27 }
 0xa81   :  { %4229 = vmatprep.subr.bf16.mxu1 %v4228_v33 }
 0xb4e   :  { %v3906_v43 = vpop.f32.mrb[12].mxu1 }
 0xb4f   :  { %v1470_v44 = vadd.f32 %v3906_v43, %v3466_v42  ;;  %v1464_v45 = vpop.f32.mrb[13].mxu1 }
 0xb50   :  { %v1465_v46 = vadd.f32 %v3466_v42, %v1464_v45 }
 0xb51   :  { %v1476_v47 = vmul.f32 0.044715, %v1470_v44  ;;  %v1474_v61 = vmul.f32 0.5, %v1470_v44 }
 0xb52   :  { %v1475_v48 = vmul.f32 0.044715, %v1465_v46  ;;  %v1473_v59 = vmul.f32 0.5, %v1465_v46 }
 0xb53   :  { %v1478_v49 = vmul.f32 %v1476_v47, %v1470_v44 }
 0xb54   :  { %v1477_v50 = vmul.f32 %v1475_v48, %v1465_v46 }
 0xb55   :  { %v1480_v51 = vmul.f32 %v1478_v49, %v1470_v44 }
 0xb56   :  { %v1479_v52 = vmul.f32 %v1477_v50, %v1465_v46 }
 0xb57   :  { %v1482_v53 = vadd.f32 %v1480_v51, %v1470_v44  ;;  %v3472_v51 = vld [vmem:[%s5198_s8 + $0x2] ss:$0 sm:$0xff] }
 0xb58   :  { %v1481_v54 = vadd.f32 %v1479_v52, %v1465_v46 }
 0xb59   :  { %v1484_v55 = vmul.f32 0.7978846, %v1482_v53 }
 0xb5a   :  { %v1483_v26 = vmul.f32 0.7978846, %v1481_v54 }
 0xb5b   :  { %4385 = vtanh.f32 %v1484_v55  ;;  %v3473_v55 = vld [vmem:[%s5198_s8 + $0x3] ss:$0 sm:$0xff] }
 0xb5c   :  { %4387 = vtanh.f32 %v1483_v26 }
 0xb65   :  { %v4386_v21 = vpop.eup %4385 }
 0xb66   :  { %v4388_v56 = vpop.eup %4387  ;;  %v1488_v57 = vadd.f32 1.0, %v4386_v21 }
 0xb67   :  { %v1487_v60 = vadd.f32 1.0, %v4388_v56  ;;  %v3484_v56 = vld [vmem:[%s5194_s4 + $0x128] sm:$0xff] }
 0xb68   :  { %v1490_v63 = vmul.f32 %v1488_v57, %v1474_v61  ;;  %v3485_v57 = vld [vmem:[%s5194_s4 + $0x130] sm:$0xff] }
 0xb69   :  { %v1489_v62 = vmul.f32 %v1487_v60, %v1473_v59 }
 0xb6b   :  { %3923 = vmatprep.mubr.msk.f32.mxu0 %vm1504_vm1, %v1489_v62  ;;  %v4232_v62 = vpack.c.bf16 %v3485_v57, %v3484_v56 }
 0xb6c   :  { %3924 = vmatmul.mubr.msk.f32.vlgmr.msra.gmra.mrb[12].mxu0 %vm1504_vm1, %v1490_v63  ;;  %v3495_v63 = vld [vmem:[%s5194_s4 + $0x160] ss:$0 sm:$0xff] }
 0xb6d   :  { %4239 = vmatpush3.bf16.msra.mxu0 %v4236_v22  ;;  %v3508_v22 = vld [vmem:[%s5194_s4 + $0x178] sm:$0xff] }
 0xb6e   :  { %v4258_v27 = vpack.c.bf16 %v3509_v24, %v3508_v22 }
 0xc3f   :  { %v3925_v1 = vpop.f32.mrb[12].mxu0 }
 0xc40   :  { %v1583_v3 = vadd.f32 %v3925_v1, %v3469_v0  ;;  %v1577_v4 = vpop.f32.mrb[13].mxu0 }
 0xc41   :  { %v1578_v5 = vadd.f32 %v3469_v0, %v1577_v4  ;;  %v3479_v0 = vld [vmem:[%s5194_s4 + $0x110] ss:$0 sm:$0xff] }
 0xc42   :  { %v4829_v6 = vadd.f32 %v1583_v3, %v1382_v30 }
 0xc43   :  { %v1586_v7 = vadd.f32 %v1578_v5, %v1381_v28  ;;  %v3492_v28 = vld [vmem:[%s5194_s4 + $0x150] sm:$0xff] }
 0xc44   :  { %v1593_v8 = vsel %vm174_vm7, %v4829_v6, 0.0  ;;  %v1597_v12 = vmul.f32 %v4829_v6, %v4829_v6  ;;  %v4240_v30 = vpack.c.bf16 %v3493_v29, %v3492_v28  ;;  %v3522_v28 = vld [vmem:[%s5194_s4 + $0x1b8] sm:$0xff]  ;;  %v3523_v29 = vld [vmem:[%s5194_s4 + $0x1c0] sm:$0xff] }
 0xc45   :  { %1594 = vadd.xlane.f32.xlu0 %v1593_v8  ;;  %v1596_v9 = vmul.f32 %v1586_v7, %v1586_v7  ;;  %v1590_v11 = vsel %vm174_vm7, %v1586_v7, 0.0 }
 0xc46   :  { %v1601_v13 = vsel %vm174_vm7, %v1597_v12, 0.0  ;;  %4241 = vmatprep.subr.bf16.mxu0 %v4240_v30 }
 0xc47   :  { %v1598_v10 = vsel %vm174_vm7, %v1596_v9, 0.0  ;;  %4243 = vmatpush3.bf16.msra.mxu0 %v4240_v30  ;;  %v4270_v30 = vpack.c.bf16 %v3523_v29, %v3522_v28 }
 0xc48   :  { %1599 = vadd.xlane.f32.xlu1 %v1598_v10  ;;  %v3487_v10 = vld [vmem:[%s5194_s4 + $0x138] ss:$0 sm:$0xff] }
 0xc49   :  { %1591 = vadd.xlane.f32.xlu0 %v1590_v11 }
 0xc4d   :  { %1602 = vadd.xlane.f32.xlu0 %v1601_v13 }
 0xcd2   :  { %v1595_v34 = vpop.xlane.xlu0 %1594 }
 0xcd3   :  { %v1605_v37 = vmul.f32 0.03125, %v1595_v34 }
 0xcd5   :  { %v1600_v35 = vpop.xlane.xlu1 %1599  ;;  %v1609_v41 = vmul.f32 %v1605_v37, %v1605_v37  ;;  %v1615_v52 = vsub.f32 %v4829_v6, %v1605_v37 }
 0xcd6   :  { %v1592_v36 = vpop.xlane.xlu0 %1591  ;;  %v1606_v39 = vmul.f32 0.03125, %v1600_v35 }
 0xcd7   :  { %v1604_v38 = vmul.f32 0.03125, %v1592_v36 }
 0xcd9   :  { %v1608_v40 = vmul.f32 %v1604_v38, %v1604_v38  ;;  %v1614_v49 = vsub.f32 %v1586_v7, %v1604_v38 }
 0xcda   :  { %v1603_v17 = vpop.xlane.xlu0 %1602 }
 0xcdb   :  { %v1610_v42 = vsub.f32 %v1606_v39, %v1608_v40  ;;  %v1607_v43 = vmul.f32 0.03125, %v1603_v17 }
 0xcdd   :  { %v1612_v44 = vmax.f32 %v1610_v42, 0.0  ;;  %v1611_v45 = vsub.f32 %v1607_v43, %v1609_v41  ;;  %v3511_v41 = vld [vmem:[%s5194_s4 + $0x188] ss:$0 sm:$0xff] }
 0xcdf   :  { %v1616_v46 = vadd.f32 1e-12, %v1612_v44  ;;  %v1613_v47 = vmax.f32 %v1611_v45, 0.0  ;;  %v3527_v45 = vld [vmem:[%s5194_s4 + $0x1d8] ss:$0 sm:$0xff] }
 0xce1   :  { %4389 = vrsqrt.f32 %v1616_v46  ;;  %v1617_v48 = vadd.f32 1e-12, %v1613_v47 }
 0xce3   :  { %4391 = vrsqrt.f32 %v1617_v48 }
 0xceb   :  { %v4390_v50 = vpop.eup %4389 }
 0xcec   :  { %v1620_v53 = vmul.f32 %v4390_v50, %v1614_v49 }
 0xced   :  { %v4392_v54 = vpop.eup %4391 }
 0xcee   :  { %v1626_v26 = vmul.f32 %v3472_v51, %v1620_v53  ;;  %v1621_v21 = vmul.f32 %v4392_v54, %v1615_v52 }
 0xcf0   :  { %v4881_v59 = vadd.f32 %v3473_v55, %v1626_v26  ;;  %v1627_v60 = vmul.f32 %v3472_v51, %v1621_v21 }
 0xcf2   :  { %v4883_v61 = vadd.f32 %v3473_v55, %v1627_v60  ;;  %3934 = vmatprep.mubr.msk.f32.mxu1 %vm174_vm7, %v4881_v59  ;;  %3956 = vmatprep.mubr.msk.f32.mxu0 %vm174_vm7, %v4881_v59 }
 0xcf4   :  { %3935 = vmatmul.mubr.msk.f32.vlgmr.msra.gmra.mrb[14].mxu1 %vm174_vm7, %v4883_v61  ;;  %3957 = vmatmul.mubr.msk.f32.vlgmr.msra.gmra.mrb[14].mxu0 %vm174_vm7, %v4883_v61 }
 0xcf5   :  { %4231 = vmatpush3.bf16.msra.mxu1 %v4228_v33  ;;  %3945 = vmatprep.mubr.msk.f32.mxu1 %vm174_vm7, %v4881_v59  ;;  %v4274_v33 = vpack.c.bf16 %v3525_v32, %v3524_v31 }
 0xcf6   :  { %4233 = vmatprep.subr.bf16.mxu1 %v4232_v62 }
 0xcf9   :  { %4235 = vmatpush3.bf16.msra.mxu1 %v4232_v62  ;;  %v3514_v62 = vld [vmem:[%s5194_s4 + $0x190] sm:$0xff] }
 0xcfc   :  { %3946 = vmatmul.mubr.msk.f32.vlgmr.msra.gmra.mrb[16].mxu1 %vm174_vm7, %v4883_v61 }
 0xdc7   :  { %v3936_v1 = vpop.f32.mrb[14].mxu1  ;;  %v3958_v3 = vpop.f32.mrb[14].mxu0 }
 0xdc8   :  { %v1892_v4 = vadd.f32 %v3958_v3, %v3495_v63  ;;  %v1716_v5 = vpop.f32.mrb[15].mxu1  ;;  %v1886_v6 = vpop.f32.mrb[15].mxu0  ;;  %v1722_v25 = vadd.f32 %v3936_v1, %v3479_v0 }
 0xdc9   :  { %v1717_v7 = vadd.f32 %v3479_v0, %v1716_v5  ;;  %v1887_v8 = vadd.f32 %v3495_v63, %v1886_v6  ;;  %v3515_v63 = vld [vmem:[%s5194_s4 + $0x198] sm:$0xff]  ;;  %v3516_v5 = vld [vmem:[%s5194_s4 + $0x1a0] sm:$0xff]  ;;  %v3517_v6 = vld [vmem:[%s5194_s4 + $0x1a8] sm:$0xff] }
 0xdca   :  { %v4262_v0 = vpack.c.bf16 %v3515_v63, %v3514_v62 }
 0xdcb   :  { %v4250_v9 = vpack.c.bf16 %v1892_v4, %v1887_v8  ;;  %3963 = vmatprep.mubr.msk.f32.mxu1 %vm517_vm8, %v1717_v7 }
 0xdcd   :  { %4251 = vmatprep.subr.bf16.mxu0 %v4250_v9 }
 0xdce   :  { %4253 = vmatpush3.bf16.msra.mxu0 %v4250_v9 }
 0xdcf   :  { %v3947_v11 = vpop.f32.mrb[16].mxu1  ;;  %4263 = vmatprep.subr.bf16.mxu0 %v4262_v0 }
 0xdd0   :  { %v1807_v12 = vadd.f32 %v3947_v11, %v3487_v10  ;;  %v1801_v13 = vpop.f32.mrb[17].mxu1 }
 0xdd1   :  { %v1802_v16 = vadd.f32 %v3487_v10, %v1801_v13  ;;  %v4266_v10 = vpack.c.bf16 %v3517_v6, %v3516_v5  ;;  %v3548_v6 = vld [vmem:[%s5196_s6 + $0x40] sm:$0xff] }
 0xdd3   :  { %v4244_v2 = vpack.c.bf16 %v1807_v12, %v1802_v16 }
 0xdd5   :  { %4246 = vmatprep.subr.msk.bf16.mxu1 %vm4659_vm9, %v4244_v2 }
 0xdd6   :  { %4249 = vmatpush3.bf16.xpose.msk.msra.mxu1 %vm4659_vm9, %v4244_v2 }
 0xdd7   :  { %4255 = vmatprep.subr.bf16.mxu1 %v4254_v19 }
 0xddd   :  { %3964 = vmatmul.mubr.msk.f32.vlgmr.msra.gmra.mrb[18].mxu1 %vm517_vm8, %v1722_v25 }
 0xdde   :  { %4257 = vmatpush3.bf16.msra.mxu1 %v4254_v19  ;;  %3981 = vmatprep.mubr.msk.f32.mxu1 %vm174_vm7, %v4881_v59 }
 0xddf   :  { %4259 = vmatprep.subr.bf16.mxu1 %v4258_v27 }
 0xde2   :  { %4261 = vmatpush3.bf16.msra.mxu1 %v4258_v27 }
 0xde3   :  { %4271 = vmatprep.subr.bf16.mxu1 %v4270_v30 }
 0xde5   :  { %3982 = vmatmul.mubr.msk.f32.vlgmr.msra.gmra.mrb[20].mxu1 %vm174_vm7, %v4883_v61 }
 0xde6   :  { %4273 = vmatpush3.bf16.msra.mxu1 %v4270_v30  ;;  %4003 = vmatprep.mubr.msk.f32.mxu1 %vm174_vm7, %v4881_v59 }
 0xde7   :  { %4275 = vmatprep.subr.bf16.mxu1 %v4274_v33 }
 0xdea   :  { %4277 = vmatpush3.bf16.msra.mxu1 %v4274_v33 }
 0xded   :  { %4004 = vmatmul.mubr.msk.f32.vlgmr.msra.gmra.mrb[22].mxu1 %vm174_vm7, %v4883_v61 }
 0xeb0   :  { %v3965_v34 = vpop.f32.mrb[18].mxu1 }
 0xeb1   :  { %v1983_v35 = vmul.f32 0.25, %v3965_v34  ;;  %v1973_v36 = vpop.f32.mrb[19].mxu1 }
 0xeb2   :  { %v1982_v37 = vmul.f32 0.25, %v1973_v36 }
 0xeb3   :  { %v1985_v38 = vadd.f32 %v1983_v35, %v4703_v23 }
 0xeb4   :  { %v1984_v39 = vadd.f32 %v1982_v37, %v4701_v18 }
 0xeb5   :  { %v1989_v40 = vsel %vm517_vm8, %v1985_v38, -inf }
 0xeb6   :  { %1990 = vmax.xlane.f32.xlu0 %v1989_v40  ;;  %v1986_v17 = vsel %vm517_vm8, %v1984_v39, -inf  ;;  %v3536_v40 = vld [vmem:[%s5195_s5 + $0x30] sm:$0xff] }
 0xeb7   :  { %1987 = vmax.xlane.f32.xlu1 %v1986_v17  ;;  %v3537_v17 = vld [vmem:[%s5195_s5 + $0x38] sm:$0xff] }
 0xeb8   :  { %v3983_v42 = vpop.f32.mrb[20].mxu1 }
 0xeb9   :  { %v2174_v43 = vadd.f32 %v3983_v42, %v3511_v41  ;;  %v2168_v44 = vpop.f32.mrb[21].mxu1 }
 0xeba   :  { %v2169_v11 = vadd.f32 %v3511_v41, %v2168_v44  ;;  %v4288_v41 = vpack.c.bf16 %v3537_v17, %v3536_v40  ;;  %v3555_v17 = vld [vmem:[%s5197_s7 + $0x58] sm:$0xff] }
 0xec0   :  { %v4005_v46 = vpop.f32.mrb[22].mxu1 }
 0xec1   :  { %v2344_v47 = vadd.f32 %v4005_v46, %v3527_v45  ;;  %v2338_v48 = vpop.f32.mrb[23].mxu1 }
 0xec2   :  { %v2339_v49 = vadd.f32 %v3527_v45, %v2338_v48  ;;  %v3504_v48 = vld [vmem:[%s5195_s5 + $0x20] sm:$0xff] }
 0xec4   :  { %v4284_v50 = vpack.c.bf16 %v2344_v47, %v2339_v49  ;;  %v3505_v49 = vld [vmem:[%s5195_s5 + $0x28] sm:$0xff] }
 0xec6   :  { %4285 = vmatprep.subr.bf16.mxu1 %v4284_v50 }
 0xec7   :  { %4287 = vmatpush3.bf16.msra.mxu1 %v4284_v50  ;;  %v4292_v50 = vpack.c.bf16 %v3505_v49, %v3504_v48  ;;  %v3550_v49 = vld [vmem:[%s5196_s6 + $0x48] ss:$0 sm:$0xff] }
 0xf43   :  { %v1991_v51 = vpop.xlane.xlu0 %1990 }
 0xf44   :  { %v1993_v52 = vsub.f32 %v1985_v38, %v1991_v51  ;;  %v1988_v53 = vpop.xlane.xlu1 %1987 }
 0xf45   :  { %v1992_v54 = vsub.f32 %v1984_v39, %v1988_v53  ;;  %v3542_v53 = vld [vmem:[%s5198_s8 + $0x9] ss:$0 sm:$0xff] }
 0xf46   :  { %v1996_v55 = vmul.f32 1.442695, %v1993_v52 }
 0xf47   :  { %v1994_v26 = vmul.f32 1.442695, %v1992_v54 }
 0xf48   :  { %4393 = vpow2.f32 %v1996_v55 }
 0xf49   :  { %4395 = vpow2.f32 %v1994_v26 }
 0xf52   :  { %v4394_v21 = vpop.eup %4393 }
 0xf53   :  { %v4396_v56 = vpop.eup %4395  ;;  %v2001_v57 = vsel %vm517_vm8, %v4394_v21, 0.0 }
 0xf54   :  { %2002 = vadd.xlane.f32.xlu0 %v2001_v57  ;;  %v1998_v60 = vsel %vm517_vm8, %v4396_v56, 0.0 }
 0xf55   :  { %1999 = vadd.xlane.f32.xlu1 %v1998_v60 }
 0xfe1   :  { %v2003_v1 = vpop.xlane.xlu0 %2002 }
 0xfe2   :  { %4397 = vrcp.f32 %v2003_v1  ;;  %v2000_v3 = vpop.xlane.xlu1 %1999 }
 0xfe3   :  { %4399 = vrcp.f32 %v2000_v3 }
 0xfec   :  { %v4398_v4 = vpop.eup %4397 }
 0xfed   :  { %v4400_v7 = vpop.eup %4399  ;;  %v2007_v9 = vmul.f32 %v4398_v4, %v4394_v21  ;;  %v3547_v4 = vld [vmem:[%s5196_s6 + $0x38] sm:$0xff] }
 0xfee   :  { %v2006_v8 = vmul.f32 %v4400_v7, %v4396_v56  ;;  %v4300_v7 = vpack.c.bf16 %v3548_v6, %v3547_v4 }
 0xff0   :  { %3970 = vmatprep.mubr.msk.f32.mxu0 %vm517_vm8, %v2006_v8 }
 0xff1   :  { %3971 = vmatmul.mubr.msk.f32.vlgmr.msra.gmra.mrb[16].mxu0 %vm517_vm8, %v2007_v9 }
 0xff2   :  { %4265 = vmatpush3.bf16.msra.mxu0 %v4262_v0  ;;  %3992 = vmatprep.mubr.msk.f32.mxu0 %vm174_vm7, %v4881_v59 }
 0xff3   :  { %4267 = vmatprep.subr.bf16.mxu0 %v4266_v10 }
 0xff6   :  { %4269 = vmatpush3.bf16.msra.mxu0 %v4266_v10 }
 0xff9   :  { %3993 = vmatmul.mubr.msk.f32.vlgmr.msra.gmra.mrb[18].mxu0 %vm174_vm7, %v4883_v61 }
 0xffa   :  { %4010 = vmatprep.mubr.msk.f32.mxu0 %vm517_vm8, %v2169_v11 }
0x10c4   :  { %v3972_v12 = vpop.f32.mrb[16].mxu0 }
0x10c5   :  { %v2080_v13 = vpop.f32.mrb[17].mxu0 }
0x10cc   :  { %v3994_v15 = vpop.f32.mrb[18].mxu0 }
0x10cd   :  { %v2259_v16 = vadd.f32 %v3994_v15, %v3519_v14  ;;  %v2253_v2 = vpop.f32.mrb[19].mxu0 }
0x10ce   :  { %v2254_v19 = vadd.f32 %v3519_v14, %v2253_v2 }
0x10d0   :  { %v4278_v22 = vpack.c.bf16 %v2259_v16, %v2254_v19 }
0x10d2   :  { %4280 = vmatprep.subr.msk.bf16.mxu0 %vm4659_vm9, %v4278_v22 }
0x10d3   :  { %4283 = vmatpush3.bf16.xpose.msk.msra.mxu0 %vm4659_vm9, %v4278_v22  ;;  %vm3374_vm9 = vcmask 351232  }
0x10d4   :  { %4289 = vmatprep.subr.bf16.mxu0 %v4288_v41 }
0x10da   :  { %4011 = vmatmul.mubr.msk.f32.vlgmr.msra.gmra.mrb[20].mxu0 %vm517_vm8, %v2174_v43 }
0x10db   :  { %4291 = vmatpush3.bf16.msra.mxu0 %v4288_v41  ;;  %v3556_v41 = vld [vmem:[%s5197_s7 + $0x60] sm:$0xff] }
0x10dc   :  { %4293 = vmatprep.subr.bf16.mxu0 %v4292_v50 }
0x11ad   :  { %v4012_v24 = vpop.f32.mrb[20].mxu0 }
0x11ae   :  { %v2435_v25 = vmul.f32 0.25, %v4012_v24  ;;  %v2425_v27 = vpop.f32.mrb[21].mxu0 }
0x11af   :  { %v2434_v28 = vmul.f32 0.25, %v2425_v27 }
0x11b0   :  { %v2437_v29 = vadd.f32 %v2435_v25, %v4703_v23 }
0x11b1   :  { %v2436_v30 = vadd.f32 %v2434_v28, %v4701_v18 }
0x11b2   :  { %v2441_v31 = vsel %vm517_vm8, %v2437_v29, -inf }
0x11b3   :  { %2442 = vmax.xlane.f32.xlu0 %v2441_v31  ;;  %v2438_v32 = vsel %vm517_vm8, %v2436_v30, -inf }
0x11b4   :  { %2439 = vmax.xlane.f32.xlu1 %v2438_v32  ;;  %v3543_v32 = vld [vmem:[%s5198_s8 + $0x5] ss:$0 sm:$0xff] }
0x1240   :  { %v2443_v33 = vpop.xlane.xlu0 %2442 }
0x1241   :  { %v2445_v34 = vsub.f32 %v2437_v29, %v2443_v33  ;;  %v2440_v58 = vpop.xlane.xlu1 %2439 }
0x1242   :  { %v2444_v35 = vsub.f32 %v2436_v30, %v2440_v58 }
0x1243   :  { %v2448_v36 = vmul.f32 1.442695, %v2445_v34 }
0x1244   :  { %v2446_v37 = vmul.f32 1.442695, %v2444_v35  ;;  %v3544_v35 = vld [vmem:[%s5198_s8 + $0x6] ss:$0 sm:$0xff] }
0x1245   :  { %4401 = vpow2.f32 %v2448_v36 }
0x1246   :  { %4403 = vpow2.f32 %v2446_v37 }
0x124f   :  { %v4402_v38 = vpop.eup %4401 }
0x1250   :  { %v4404_v39 = vpop.eup %4403  ;;  %v2453_v23 = vsel %vm517_vm8, %v4402_v38, 0.0 }
0x1251   :  { %2454 = vadd.xlane.f32.xlu0 %v2453_v23  ;;  %v2450_v18 = vsel %vm517_vm8, %v4404_v39, 0.0  ;;  %v3553_v23 = vld [vmem:[%s5197_s7 + $0x48] sm:$0xff] }
0x1252   :  { %2451 = vadd.xlane.f32.xlu1 %v2450_v18  ;;  %v3554_v18 = vld [vmem:[%s5197_s7 + $0x50] sm:$0xff] }
0x1253   :  { %v4304_v40 = vpack.c.bf16 %v3554_v18, %v3553_v23 }
0x12de   :  { %v2455_v42 = vpop.xlane.xlu0 %2454 }
0x12df   :  { %4405 = vrcp.f32 %v2455_v42  ;;  %v2452_v43 = vpop.xlane.xlu1 %2451  ;;  %v3557_v42 = vld [vmem:[%s5197_s7 + $0x68] sm:$0xff] }
0x12e0   :  { %4407 = vrcp.f32 %v2452_v43  ;;  %v4308_v43 = vpack.c.bf16 %v3556_v41, %v3555_v17 }
0x12e9   :  { %v4406_v44 = vpop.eup %4405 }
0x12ea   :  { %v4408_v45 = vpop.eup %4407  ;;  %v2459_v47 = vmul.f32 %v4406_v44, %v4402_v38  ;;  %v3558_v44 = vld [vmem:[%s5197_s7 + $0x70] sm:$0xff] }
0x12eb   :  { %v2458_v46 = vmul.f32 %v4408_v45, %v4404_v39  ;;  %v4312_v45 = vpack.c.bf16 %v3558_v44, %v3557_v42 }
0x12ed   :  { %4017 = vmatprep.mubr.msk.f32.mxu1 %vm517_vm8, %v2458_v46  ;;  %v3559_v46 = vld [vmem:[%s5197_s7 + $0x78] sm:$0xff] }
0x12ee   :  { %4018 = vmatmul.mubr.msk.f32.vlgmr.msra.gmra.mrb[24].mxu1 %vm517_vm8, %v2459_v47  ;;  %v3560_v47 = vld [vmem:[%s5197_s7 + $0x80] sm:$0xff] }
0x12ef   :  { %v4316_v48 = vpack.c.bf16 %v3560_v47, %v3559_v46 }
0x13c1   :  { %v4019_v51 = vpop.f32.mrb[24].mxu1 }
0x13c2   :  { %v2532_v52 = vpop.f32.mrb[25].mxu1 }
0x13c3   :  { %4024 = vmatprep.mubr.msk.f32.mxu0 %vm517_vm8, %v2532_v52 }
0x13c4   :  { %4025 = vmatmul.mubr.msk.f32.vlgmr.msra.gmra.mrb[22].mxu0 %vm517_vm8, %v4019_v51 }
0x13c5   :  { %4295 = vmatpush3.bf16.msra.mxu0 %v4292_v50  ;;  %4031 = vmatprep.mubr.msk.f32.mxu0 %vm517_vm8, %v2080_v13 }
0x13c6   :  { %4305 = vmatprep.subr.bf16.mxu0 %v4304_v40 }
0x13cc   :  { %4032 = vmatmul.mubr.msk.f32.vlgmr.msra.gmra.mrb[22].mxu0 %vm517_vm8, %v3972_v12 }
0x13cd   :  { %4307 = vmatpush3.bf16.msra.mxu0 %v4304_v40 }
0x13ce   :  { %4309 = vmatprep.subr.bf16.mxu0 %v4308_v43 }
0x13d1   :  { %4311 = vmatpush3.bf16.msra.mxu0 %v4308_v43 }
0x13d2   :  { %4313 = vmatprep.subr.bf16.mxu0 %v4312_v45 }
0x13d5   :  { %4315 = vmatpush3.bf16.msra.mxu0 %v4312_v45 }
0x13d6   :  { %4317 = vmatprep.subr.bf16.mxu0 %v4316_v48 }
0x13d9   :  { %4319 = vmatpush3.bf16.msra.mxu0 %v4316_v48 }
0x149f   :  { %v4033_v54 = vpop.f32.mrb[22].mxu0 }
0x14a0   :  { %v2712_v55 = vadd.f32 %v4033_v54, %v3542_v53  ;;  %v2697_v26 = vpop.f32.mrb[23].mxu0 }
0x14a1   :  { %v2711_v21 = vadd.f32 %v3542_v53, %v2697_v26 }
0x14a2   :  { %v2714_v56 = vadd.f32 %v2712_v55, %v4883_v61  ;;  %v3545_v61 = vld [vmem:[%s5196_s6 + $0x28] sm:$0xff] }
0x14a3   :  { %v2713_v57 = vadd.f32 %v2711_v21, %v4881_v59  ;;  %v3546_v59 = vld [vmem:[%s5196_s6 + $0x30] sm:$0xff]  ;;  %s3356_s6 = scalar_select %p3355_p3, 1, 0 }
0x14a4   :  { %v2720_v60 = vsel %vm174_vm7, %v2714_v56, 0.0  ;;  %v2724_v62 = vmul.f32 %v2714_v56, %v2714_v56  ;;  %v4296_v5 = vpack.c.bf16 %v3546_v59, %v3545_v61 }
0x14a5   :  { %2721 = vadd.xlane.f32.xlu0 %v2720_v60  ;;  %v2717_v63 = vsel %vm174_vm7, %v2713_v57, 0.0  ;;  %v2723_v0 = vmul.f32 %v2713_v57, %v2713_v57 }
0x14a6   :  { %2718 = vadd.xlane.f32.xlu1 %v2717_v63  ;;  %v2728_v1 = vsel %vm174_vm7, %v2724_v62, 0.0  ;;  %4297 = vmatprep.subr.bf16.mxu1 %v4296_v5 }
0x14a7   :  { %v2725_v3 = vsel %vm174_vm7, %v2723_v0, 0.0  ;;  %4299 = vmatpush3.bf16.msra.mxu1 %v4296_v5 }
0x14a8   :  { %4301 = vmatprep.subr.bf16.mxu1 %v4300_v7 }
0x14a9   :  { %2729 = vadd.xlane.f32.xlu0 %v2728_v1 }
0x14aa   :  { %2726 = vadd.xlane.f32.xlu1 %v2725_v3 }
0x14ab   :  { %4303 = vmatpush3.bf16.msra.mxu1 %v4300_v7 }
0x1532   :  { %v2722_v8 = vpop.xlane.xlu0 %2721 }
0x1533   :  { %v2732_v9 = vmul.f32 0.03125, %v2722_v8  ;;  %v2719_v10 = vpop.xlane.xlu1 %2718  ;;  %v3562_v8 = vld [vmem:[%s5197_s7 + $0x88] ss:$0 sm:$0xff]  ;;  %s4456_s7 = smov 43  }
0x1534   :  { %v2731_v11 = vmul.f32 0.03125, %v2719_v10 }
0x1535   :  { %v2736_v13 = vmul.f32 %v2732_v9, %v2732_v9  ;;  %v2742_v29 = vsub.f32 %v2714_v56, %v2732_v9 }
0x1536   :  { %v2730_v12 = vpop.xlane.xlu0 %2729  ;;  %v2735_v16 = vmul.f32 %v2731_v11, %v2731_v11  ;;  %v2741_v31 = vsub.f32 %v2713_v57, %v2731_v11 }
0x1537   :  { %v2734_v14 = vmul.f32 0.03125, %v2730_v12  ;;  %v2727_v15 = vpop.xlane.xlu1 %2726 }
0x1538   :  { %v2733_v2 = vmul.f32 0.03125, %v2727_v15 }
0x1539   :  { %v2738_v19 = vsub.f32 %v2734_v14, %v2736_v13 }
0x153a   :  { %v2737_v22 = vsub.f32 %v2733_v2, %v2735_v16 }
0x153b   :  { %v2740_v24 = vmax.f32 %v2738_v19, 0.0 }
0x153c   :  { %v2739_v25 = vmax.f32 %v2737_v22, 0.0 }
0x153d   :  { %v2744_v27 = vadd.f32 1e-12, %v2740_v24 }
0x153e   :  { %v2743_v28 = vadd.f32 1e-12, %v2739_v25  ;;  %v3014_v25 = vld [vmem:[%s5199_s9] sm:$0xff] }
0x153f   :  { %4409 = vrsqrt.f32 %v2744_v27  ;;  %v3015_v27 = vld [vmem:[%s5199_s9 + $0x8] sm:$0xff] }
0x1540   :  { %4411 = vrsqrt.f32 %v2743_v28  ;;  %v3576_v28 = vld [vmem:[%s5199_s9 + $0x50] sm:$0xff] }
0x1549   :  { %v4410_v30 = vpop.eup %4409 }
0x154a   :  { %v4412_v33 = vpop.eup %4411  ;;  %v2748_v34 = vmul.f32 %v4410_v30, %v2742_v29  ;;  %v4453_v29 = vmov 0.0|0.0   ;;  %v4321_v30 = vpack.c.bf16 %v3015_v27, %v3014_v25  ;;  %v3272_v25 = vstv %s3271_s17  ;;  %v3581_v27 = vld [vmem:[%s5199_s9 + $0x70] ss:$0 sm:$0xff] }
0x154b   :  { %v2747_v58 = vmul.f32 %v4412_v33, %v2741_v31  ;;  %4320 = vmatprep.subr.bf16.mxu1 %v4453_v29  ;;  %4332 = vmatprep.subr.bf16.mxu0 %v4453_v29  ;;  %v3577_v31 = vld [vmem:[%s5199_s9 + $0x58] sm:$0xff]  ;;  %vm3273_vm6 = vcmp.eq.s32.totalorder %v3272_v25, 1 }
0x154c   :  { %v2754_v36 = vmul.f32 %v3543_v32, %v2748_v34  ;;  %v3017_v33 = vld [vmem:[%s5199_s9 + $0x18] sm:$0xff]  ;;  %v4333_v34 = vpack.c.bf16 %v3577_v31, %v3576_v28 }
0x154d   :  { %v2753_v37 = vmul.f32 %v3543_v32, %v2747_v58  ;;  %v3016_v32 = vld [vmem:[%s5199_s9 + $0x10] sm:$0xff]  ;;  %v3578_v58 = vld [vmem:[%s5199_s9 + $0x60] sm:$0xff] }
0x154e   :  { %v2760_v39 = vadd.f32 %v3544_v35, %v2754_v36  ;;  %v4324_v36 = vpack.c.bf16 %v3017_v33, %v3016_v32 }
0x154f   :  { %v2759_v38 = vadd.f32 %v3544_v35, %v2753_v37  ;;  %v3579_v35 = vld [vmem:[%s5199_s9 + $0x68] sm:$0xff] }
0x1550   :  { %v4336_v37 = vpack.c.bf16 %v3579_v35, %v3578_v58  ;;  %v3357_v58 = vstv %s3356_s6  ;;  %v3588_v35 = vld [vmem:[%s5199_s9 + $0x98] ss:$0 sm:$0xff] }
0x1551   :  { %4042 = vmatprep.mubr.msk.f32.mxu1 %vm174_vm7, %v2759_v38  ;;  %vm3358_vm8 = vcmp.eq.s32.totalorder %v3357_v58, 1 }
0x1552   :  { %4043 = vmatmul.mubr.msk.f32.vlgmr.msra.gmra.mrb[26].mxu1 %vm174_vm7, %v2760_v39 }
0x1553   :  { %4072 = vmatprep.mubr.msk.f32.mxu1 %vm4454_vm2, %v4448_v20  ;;  %4322 = vmatpush3.bf16.msra.mxu1 %v4321_v30 }
0x1554   :  { %4323 = vmatprep.subr.bf16.mxu1 %v4453_v29 }
0x1557   :  { %4325 = vmatpush3.bf16.msra.mxu1 %v4324_v36 }
0x1558   :  { %4326 = vmatprep.subr.bf16.mxu1 %v4453_v29 }
0x1625   :  { %v4044_v50 = vpop.f32.mrb[26].mxu1 }
0x1626   :  { %v2849_v51 = vadd.f32 %v4044_v50, %v3550_v49  ;;  %v2843_v52 = vpop.f32.mrb[27].mxu1 }
0x1627   :  { %v2844_v53 = vadd.f32 %v3550_v49, %v2843_v52 }
0x1628   :  { %v2855_v54 = vmul.f32 0.044715, %v2849_v51  ;;  %v2853_v5 = vmul.f32 0.5, %v2849_v51 }
0x1629   :  { %v2854_v55 = vmul.f32 0.044715, %v2844_v53  ;;  %v2852_v59 = vmul.f32 0.5, %v2844_v53 }
0x162a   :  { %v2857_v26 = vmul.f32 %v2855_v54, %v2849_v51  ;;  %v3565_v54 = vld [vmem:[%s5198_s8 + $0x7] ss:$0 sm:$0xff] }
0x162b   :  { %v2856_v21 = vmul.f32 %v2854_v55, %v2844_v53 }
0x162c   :  { %v2859_v56 = vmul.f32 %v2857_v26, %v2849_v51 }
0x162d   :  { %v2858_v57 = vmul.f32 %v2856_v21, %v2844_v53  ;;  %v3566_v21 = vld [vmem:[%s5198_s8 + $0x8] ss:$0 sm:$0xff] }
0x162e   :  { %v2861_v60 = vadd.f32 %v2859_v56, %v2849_v51 }
0x162f   :  { %v2860_v62 = vadd.f32 %v2858_v57, %v2844_v53 }
0x1630   :  { %v2863_v63 = vmul.f32 0.7978846, %v2861_v60 }
0x1631   :  { %v2862_v0 = vmul.f32 0.7978846, %v2860_v62  ;;  %v3569_v62 = vld [vmem:[%s5199_s9 + $0x28] sm:$0xff] }
0x1632   :  { %4413 = vtanh.f32 %v2863_v63  ;;  %v3570_v63 = vld [vmem:[%s5199_s9 + $0x30] sm:$0xff] }
0x1633   :  { %4415 = vtanh.f32 %v2862_v0 }
0x163c   :  { %v4414_v1 = vpop.eup %4413 }
0x163d   :  { %v4416_v3 = vpop.eup %4415  ;;  %v2867_v61 = vadd.f32 1.0, %v4414_v1 }
0x163e   :  { %v2866_v4 = vadd.f32 1.0, %v4416_v3 }
0x163f   :  { %v2869_v7 = vmul.f32 %v2867_v61, %v2853_v5  ;;  %v4327_v61 = vpack.c.bf16 %v3570_v63, %v3569_v62 }
0x1640   :  { %v2868_v6 = vmul.f32 %v2866_v4, %v2852_v59  ;;  %v3571_v59 = vld [vmem:[%s5199_s9 + $0x38] sm:$0xff]  ;;  %v3572_v4 = vld [vmem:[%s5199_s9 + $0x40] sm:$0xff] }
0x1642   :  { %4061 = vmatprep.mubr.msk.f32.mxu0 %vm1504_vm1, %v2868_v6  ;;  %v4330_v6 = vpack.c.bf16 %v3572_v4, %v3571_v59 }
0x1643   :  { %4062 = vmatmul.mubr.msk.f32.vlgmr.msra.gmra.mrb[24].mxu0 %vm1504_vm1, %v2869_v7  ;;  %v3583_v7 = vld [vmem:[%s5199_s9 + $0x78] sm:$0xff] }
0x1644   :  { %4094 = vmatprep.mubr.msk.f32.mxu0 %vm4454_vm2, %v4448_v20  ;;  %4334 = vmatpush3.bf16.msra.mxu0 %v4333_v34 }
0x1645   :  { %4335 = vmatprep.subr.bf16.mxu0 %v4453_v29 }
0x1648   :  { %4337 = vmatpush3.bf16.msra.mxu0 %v4336_v37 }
0x1716   :  { %v4063_v9 = vpop.f32.mrb[24].mxu0 }
0x1717   :  { %v2962_v10 = vadd.f32 %v4063_v9, %v3562_v8  ;;  %v2956_v11 = vpop.f32.mrb[25].mxu0 }
0x1718   :  { %v2957_v12 = vadd.f32 %v3562_v8, %v2956_v11  ;;  %v3584_v8 = vld [vmem:[%s5199_s9 + $0x80] sm:$0xff]  ;;  %v3586_v11 = vld [vmem:[%s5199_s9 + $0x90] sm:$0xff] }
0x1719   :  { %v2966_v13 = vadd.f32 %v2962_v10, %v2760_v39  ;;  %v4339_v9 = vpack.c.bf16 %v3584_v8, %v3583_v7  ;;  %v3585_v10 = vld [vmem:[%s5199_s9 + $0x88] sm:$0xff] }
0x171a   :  { %v2965_v14 = vadd.f32 %v2957_v12, %v2759_v38  ;;  %v4342_v12 = vpack.c.bf16 %v3586_v11, %v3585_v10 }
0x171b   :  { %v2972_v15 = vsel %vm174_vm7, %v2966_v13, 0.0  ;;  %v2976_v16 = vmul.f32 %v2966_v13, %v2966_v13 }
0x171c   :  { %2973 = vadd.xlane.f32.xlu1 %v2972_v15  ;;  %v2969_v2 = vsel %vm174_vm7, %v2965_v14, 0.0  ;;  %v2975_v19 = vmul.f32 %v2965_v14, %v2965_v14 }
0x171d   :  { %2970 = vadd.xlane.f32.xlu0 %v2969_v2  ;;  %v2980_v22 = vsel %vm174_vm7, %v2976_v16, 0.0  ;;  %v3567_v16 = vld [vmem:[%s5199_s9 + $0x20] ss:$0 sm:$0xff]  ;;  %v3102_v2 = vstv %s3101_s15 }
0x171e   :  { %v2977_v24 = vsel %vm174_vm7, %v2975_v19, 0.0  ;;  %v3187_v19 = vstv %s3186_s16  ;;  %vm3103_vm4 = vcmp.eq.s32.totalorder %v3102_v2, 1 }
0x171f   :  { %vm3188_vm5 = vcmp.eq.s32.totalorder %v3187_v19, 1 }
0x1720   :  { %2981 = vadd.xlane.f32.xlu1 %v2980_v22 }
0x1721   :  { %2978 = vadd.xlane.f32.xlu0 %v2977_v24  ;;  %v3574_v24 = vld [vmem:[%s5199_s9 + $0x48] ss:$0 sm:$0xff]  ;;  %s4423_s9 = scalar_lea.vmem %s3385_s3, 32 }
0x1722   :  { %p4424_p4 = scmp.ne.s32.totalorder %s3385_s3, %s4423_s9  ;;  %p4429_p6 = scmp.lt.s32.totalorder %s4423_s9, %s4423_s9 }
0x1724   :  { %p4430_p7 = por %p4429_p6, %p4428_p5 }
0x1726   :  { %p4431_p8 = pnand %p4430_p7, %p4424_p4 }
0x17a9   :  { %v2974_v38 = vpop.xlane.xlu1 %2973 }
0x17aa   :  { %v2984_v39 = vmul.f32 0.03125, %v2974_v38  ;;  %v2971_v23 = vpop.xlane.xlu0 %2970 }
0x17ab   :  { %v2983_v18 = vmul.f32 0.03125, %v2971_v23 }
0x17ac   :  { %v2988_v17 = vmul.f32 %v2984_v39, %v2984_v39  ;;  %v2994_v51 = vsub.f32 %v2966_v13, %v2984_v39 }
0x17ad   :  { %v2982_v40 = vpop.xlane.xlu1 %2981  ;;  %v2987_v43 = vmul.f32 %v2983_v18, %v2983_v18  ;;  %v2993_v53 = vsub.f32 %v2965_v14, %v2983_v18 }
0x17ae   :  { %v2986_v41 = vmul.f32 0.03125, %v2982_v40  ;;  %v2979_v42 = vpop.xlane.xlu0 %2978 }
0x17af   :  { %v2985_v44 = vmul.f32 0.03125, %v2979_v42 }
0x17b0   :  { %v2990_v45 = vsub.f32 %v2986_v41, %v2988_v17 }
0x17b1   :  { %v2989_v46 = vsub.f32 %v2985_v44, %v2987_v43 }
0x17b2   :  { %v2992_v47 = vmax.f32 %v2990_v45, 0.0 }
0x17b3   :  { %v2991_v48 = vmax.f32 %v2989_v46, 0.0 }
0x17b4   :  { %v2996_v49 = vadd.f32 1e-12, %v2992_v47 }
0x17b5   :  { %v2995_v50 = vadd.f32 1e-12, %v2991_v48 }
0x17b6   :  { %4417 = vrsqrt.f32 %v2996_v49 }
0x17b7   :  { %4419 = vrsqrt.f32 %v2995_v50 }
0x17c0   :  { %v4418_v52 = vpop.eup %4417 }
0x17c1   :  { %v4420_v55 = vpop.eup %4419  ;;  %v3000_v26 = vmul.f32 %v4418_v52, %v2994_v51 }
0x17c2   :  { %v2999_v56 = vmul.f32 %v4420_v55, %v2993_v53 }
0x17c3   :  { %v3006_v57 = vmul.f32 %v3565_v54, %v3000_v26 }
0x17c4   :  { %v3005_v60 = vmul.f32 %v3565_v54, %v2999_v56 }
0x17c5   :  { %v3012_v0 = vadd.f32 %v3566_v21, %v3006_v57 }
0x17c6   :  { %v3011_v1 = vadd.f32 %v3566_v21, %v3005_v60 }
0x17c7   :  { %v3025_v3 = vrot.slane %v3012_v0, 7 }
0x17c9   :  { %v5123_v5 = vsel %vm3026_vm3, %v3025_v3, %v3011_v1 }
0x17ca   :  { %4073 = vmatmul.mubr.msk.f32.vlgmr.msra.gmra.mrb[28].mxu1 %vm174_vm7, %v5123_v5  ;;  %4095 = vmatmul.mubr.msk.f32.vlgmr.msra.gmra.mrb[26].mxu0 %vm174_vm7, %v5123_v5 }
0x17cb   :  { %4328 = vmatpush3.bf16.msra.mxu1 %v4327_v61  ;;  %4083 = vmatprep.mubr.msk.f32.mxu1 %vm4454_vm2, %v4448_v20 }
0x17cc   :  { %4329 = vmatprep.subr.bf16.mxu1 %v4453_v29 }
0x17cf   :  { %4331 = vmatpush3.bf16.msra.mxu1 %v4330_v6 }
0x17d0   :  { %4338 = vmatprep.subr.bf16.mxu1 %v4453_v29 }
0x17d2   :  { %4084 = vmatmul.mubr.msk.f32.vlgmr.msra.gmra.mrb[30].mxu1 %vm174_vm7, %v5123_v5 }
0x17d3   :  { %4340 = vmatpush3.bf16.msra.mxu1 %v4339_v9  ;;  %4105 = vmatprep.mubr.msk.f32.mxu1 %vm4454_vm2, %v4448_v20 }
0x17d4   :  { %4341 = vmatprep.subr.bf16.mxu1 %v4453_v29 }
0x17d7   :  { %4343 = vmatpush3.bf16.msra.mxu1 %v4342_v12 }
0x17da   :  { %4106 = vmatmul.mubr.msk.f32.vlgmr.msra.gmra.mrb[32].mxu1 %vm174_vm7, %v5123_v5 }
0x189d   :  { %v3096_v13 = vpop.f32.mrb[28].mxu1  ;;  %v3266_v20 = vpop.f32.mrb[26].mxu0 }
0x189e   :  { %v4074_v14 = vpop.f32.mrb[29].mxu1  ;;  %v4096_v15 = vpop.f32.mrb[27].mxu0  ;;  %v3097_v22 = vadd.f32 %v3567_v16, %v3096_v13  ;;  %v3267_v32 = vadd.f32 %v3581_v27, %v3266_v20 }
0x18a0   :  { %v3104_v31 = vsel %vm3103_vm4, %v3097_v22, 0.0 }
0x18a5   :  { %v3181_v28 = vpop.f32.mrb[30].mxu1 }
0x18a6   :  { %v3182_v29 = vadd.f32 %v3574_v24, %v3181_v28  ;;  %v4085_v30 = vpop.f32.mrb[31].mxu1 }
0x18a8   :  { %v3189_v33 = vsel %vm3188_vm5, %v3182_v29, %v3104_v31 }
0x18a9   :  { %v3274_v34 = vsel %vm3273_vm6, %v3267_v32, %v3189_v33 }
0x18ad   :  { %v3351_v36 = vpop.f32.mrb[32].mxu1 }
0x18ae   :  { %v3352_v37 = vadd.f32 %v3588_v35, %v3351_v36  ;;  %v4107_v38 = vpop.f32.mrb[33].mxu1 }
0x18b0   :  { %v3359_v39 = vsel %vm3358_vm8, %v3352_v37, %v3274_v34 }
0x18b1   :  { %3366 = vrot.lane.b32.xlu1 %v3359_v39, %s4455_s25  ;;  %v3360_v23 = vmul.f32 0.5, %v3359_v39 }
0x18b3   :  { %4421 = vtanh.f32 %v3360_v23 }
0x18bd   :  { %v4422_v18 = vpop.eup %4421 }
0x18be   :  { %v3362_v40 = vadd.f32 1.0, %v4422_v18 }
0x18c0   :  { %v3363_v17 = vmul.f32 0.5, %v3362_v40 }
0x18c2   :  { %3370 = vrot.lane.b32.xlu0 %v3363_v17, %s4456_s7 }
0x1923   :  { %v3367_v41 = vpop.permute.xlu1 %3366 }
0x1924   :  { %v3373_v42 = vsel %vm174_vm7, %v5123_v5, %v3367_v41 }
0x1934   :  { %v3371_v43 = vpop.permute.xlu0 %3370 }
0x1935   :  { %v3375_v44 = vsel %vm3374_vm9, %v3373_v42, %v3371_v43 }
0x1936   :  { %3377 = vst.msk [vmem:[#allocation3] sm:$0x3] %vm3376_vm10, %v3375_v44 }
0x1937   :  { %4434 = shalt.err (!%p4431_p8)
}
0x1938   :  { %s4435_s2 = scalar_lea.hbm %s5200_s10, 32 }
0x1939   :  { %p4436_p9 = scmp.ne.s32.totalorder %s5200_s10, %s4435_s2  ;;  %p4439_p10 = scmp.lt.u32.totalorder %s4435_s2, %s5200_s10 }
0x193b   :  { %p4441_p11 = pnand %p4439_p10, %p4436_p9 }
0x193d   :  { %4444 = shalt.err (!%p4441_p11)
}
0x193e   :  { %3387 = dma.vmem_to_hbm [thread:$0]  %s3385_s3, 32, %s5200_s10, [#allocation4]  }
0x193f   :  { %4445 = dma.done.wait [#allocation4], 32  }
0x1940   :  { %4446 = vsyncadd [#allocation4], 4294967264 }
0x1941   :  { %3391 = vsyncpa [#allocation4], 1 }

</bundles_post_ra>
